<compile_context>
chip_gen: v7x
topology: tpu7x:2x2x1
jax: 0.10.0
libtpu: 0.0.40
codegen_flags: <defaults>
</compile_context>

<pallas_src>
import jax
import jax.numpy as jnp
from jax import lax
from jax.experimental import pallas as pl
from jax.experimental.pallas import tpu as pltpu

NUM_BINARY = 3            # implied by the module: classes {0,1,2,3}
NUM_CLASSES = NUM_BINARY + 1
EPS = 1e-5
LANE = 128

# output lane layout (per sample): raw partial sums
_L_PO, _L_P2, _L_OH, _L_OHIN = 0, 4, 8, 12
_L_NIN, _L_DIN, _L_NOUT, _L_DOUT = 16, 20, 24, 28
_L_BCE = 32
_L_WIN, _L_U1SQ, _L_WOUT, _L_U0SQ = 36, 37, 38, 39
_NUM_LANES_USED = 40


def _dice_sums_kernel(pred_ref, target_ref, uout_ref, liver_ref, out_ref):
    # pred_ref  : (bn, 4, rt, L)  prediction in (0,1), any float dtype
    # target_ref: (bn, 3, rt, L)  raw 3-channel organ target
    # uout_ref  : (bn, 2, rt, L)  liver-branch prediction
    # liver_ref : (bn, 1, rt, L)  liver {0,1} label, native (int) dtype
    # out_ref   : (bn, 1, 128)    f32 partial sums, accumulated over the r axis
    f32 = jnp.float32
    r_idx = pl.program_id(1)

    @pl.when(r_idx == 0)
    def _init():
        out_ref[...] = jnp.zeros_like(out_ref)

    def rsum(x):                              # (bn, rt, L) -> (bn, 1)
        return jnp.sum(jnp.sum(x, axis=-1, keepdims=True), axis=-2)

    # ---- class-id map: argmax over the 3 target channels (first occurrence),
    #      background (sum == 0) -> class 0, organ k -> class k + 1.
    t0 = target_ref[:, 0].astype(f32)
    t1 = target_ref[:, 1].astype(f32)
    t2 = target_ref[:, 2].astype(f32)
    bg = (t0 + t1 + t2) == 0.0
    a0 = jnp.logical_and(t0 >= t1, t0 >= t2)          # argmax == 0
    a1 = t1 >= t2                                     # (given not a0) argmax == 1
    cls_id = jnp.where(bg, 0, jnp.where(a0, 1, jnp.where(a1, 2, 3)))

    # ---- liver-branch per-pixel weights (shared across the class loop)
    liv = liver_ref[:, 0] != 0                        # bool liver mask
    u0 = uout_ref[:, 0].astype(f32)
    u1 = uout_ref[:, 1].astype(f32)
    u1sq = u1 * u1
    u0sq = u0 * u0
    w_in = jnp.where(liv, u1, 0.0)                    # uout[:,1] * liver_in
    w_out = jnp.where(liv, 0.0, u0)                   # uout[:,0] * liver_out

    vals = [None] * _NUM_LANES_USED
    vals[_L_WIN] = rsum(w_in)
    vals[_L_U1SQ] = rsum(u1sq)
    vals[_L_WOUT] = rsum(w_out)
    vals[_L_U0SQ] = rsum(u0sq)

    # ---- per-class partial sums (short unrolled loop, small live set)
    for c in range(NUM_CLASSES):
        m = cls_id == c
        p = pred_ref[:, c].astype(f32)
        po = jnp.where(m, p, 0.0)                     # pred * one_hot
        p2 = p * p
        oh = jnp.where(m, 1.0, 0.0)                   # one_hot (== its square)
        vals[_L_PO + c] = rsum(po)
        vals[_L_P2 + c] = rsum(p2)
        vals[_L_OH + c] = rsum(oh)
        vals[_L_OHIN + c] = rsum(jnp.where(liv, oh, 0.0))
        vals[_L_NIN + c] = rsum(po * w_in)            # pred_in * target_in
        vals[_L_DIN + c] = rsum(p2 * u1sq)            # pred_in^2
        vals[_L_NOUT + c] = rsum(po * w_out)          # pred_out * target_out
        vals[_L_DOUT + c] = rsum(p2 * u0sq)           # pred_out^2
        # BCE: one log per pixel (torch clamps log terms at -100)
        q = jnp.where(m, p, 1.0 - p)
        vals[_L_BCE + c] = rsum(jnp.maximum(jnp.log(q), -100.0))

    # ---- pack into lanes and accumulate across the "arbitrary" r grid axis
    bn = out_ref.shape[0]
    lane = lax.broadcasted_iota(jnp.int32, (bn, LANE), 1)
    acc = jnp.zeros((bn, LANE), f32)
    for idx, v in enumerate(vals):
        if v is not None:
            acc = jnp.where(lane == idx, v, acc)
    out_ref[...] += acc[:, None, :]


def _tpu_vmem_capacity_bytes():
    try:
        info = pltpu.get_tpu_info()
        cap = getattr(info, "vmem_capacity_bytes", None)
        if cap:
            return int(cap)
    except Exception:
        pass
    return 128 * 1024 * 1024


def _pick_tiles(n, r, row_bytes, block_target):
    # samples / block: keep >= 4 sample-blocks when N allows (>= 2 grid steps
    # per TensorCore on megacore parts)
    bn = max(1, min(n, pl.cdiv(n, 4)))
    while n % bn:
        bn -= 1
    # spatial rows / block: multiple of 8 that divides R and fits the budget
    if r % 8 == 0 and r > 8:
        rt = (block_target // max(1, bn * row_bytes)) // 8 * 8
        rt = max(8, min(r, rt))
        while r % rt:
            rt -= 8
    else:
        rt = r
    # last-resort: shrink bn if a single block is far over budget
    while bn > 1 and bn * rt * row_bytes > 2 * block_target:
        bn -= 1
        while n % bn:
            bn -= 1
    return bn, rt


def dice_loss(pred, target, uout_l, liver):
    """Pallas implementation of DiceLoss.forward. Returns per-sample loss (N,)."""
    N, C, H, W = pred.shape
    assert C == NUM_CLASSES
    assert target.shape == (N, NUM_BINARY, H, W)
    assert uout_l.shape == (N, 2, H, W)
    assert liver.shape == (N, H, W)
    S = H * W

    # lane-dense spatial layout: (R, 128) when S is a multiple of 128
    L = LANE if S % LANE == 0 else S
    R = S // L

    # reshapes only -- no wrapper-side dtype casts (each cast is an extra full
    # HBM pass); the kernel converts per-vreg and reads liver natively.
    pred_r = pred.reshape(N, C, R, L)
    target_r = target.reshape(N, NUM_BINARY, R, L)
    uout_r = uout_l.reshape(N, 2, R, L)
    liver_r = liver.reshape(N, 1, R, L)

    # generation-aware block / VMEM budget (v7x: 64 MiB physical VMEM per TC)
    vmem_cap = _tpu_vmem_capacity_bytes()
    small_vmem = vmem_cap <= 64 * 1024 * 1024
    block_target = (4 if small_vmem else 8) * 1024 * 1024
    vmem_limit = int(min((48 if small_vmem else 64) * 1024 * 1024,
                         vmem_cap * 3 // 4))

    row_bytes = L * (C * pred_r.dtype.itemsize
                     + NUM_BINARY * target_r.dtype.itemsize
                     + 2 * uout_r.dtype.itemsize
                     + liver_r.dtype.itemsize)
    bn, rt = _pick_tiles(N, R, row_bytes, block_target)
    grid = (N // bn, R // rt)

    out = pl.pallas_call(
        _dice_sums_kernel,
        out_shape=jax.ShapeDtypeStruct((N, 1, LANE), jnp.float32),
        grid=grid,
        in_specs=[
            pl.BlockSpec((bn, C, rt, L), lambda n, r: (n, 0, r, 0)),
            pl.BlockSpec((bn, NUM_BINARY, rt, L), lambda n, r: (n, 0, r, 0)),
            pl.BlockSpec((bn, 2, rt, L), lambda n, r: (n, 0, r, 0)),
            pl.BlockSpec((bn, 1, rt, L), lambda n, r: (n, 0, r, 0)),
        ],
        out_specs=pl.BlockSpec((bn, 1, LANE), lambda n, r: (n, 0, 0)),
        compiler_params=pltpu.CompilerParams(
            dimension_semantics=("parallel", "arbitrary"),
            vmem_limit_bytes=vmem_limit),
    )(pred_r, target_r, uout_r, liver_r)

    # --- cheap JAX epilogue on (N, ~40) scalars: divisions, eps, focal BCE ---
    sums = out[:, 0, :]
    sum_po = sums[:, _L_PO:_L_PO + 4]
    sum_p2 = sums[:, _L_P2:_L_P2 + 4]
    sum_oh = sums[:, _L_OH:_L_OH + 4]
    sum_ohin = sums[:, _L_OHIN:_L_OHIN + 4]
    num_in = sums[:, _L_NIN:_L_NIN + 4]
    den_pin = sums[:, _L_DIN:_L_DIN + 4]
    num_out = sums[:, _L_NOUT:_L_NOUT + 4]
    den_pout = sums[:, _L_DOUT:_L_DOUT + 4]
    bce_cls = sums[:, _L_BCE:_L_BCE + 4]
    s_win = sums[:, _L_WIN]
    s_u1sq = sums[:, _L_U1SQ]
    s_wout = sums[:, _L_WOUT]
    s_u0sq = sums[:, _L_U0SQ]

    cnt_in = jnp.sum(sum_ohin, axis=-1)          # sum_c oh_c == 1 per pixel
    cnt_out = float(S) - cnt_in
    sum_ohout = sum_oh - sum_ohin

    dice = jnp.sum(2.0 * sum_po / (sum_p2 + sum_oh + EPS), axis=-1)
    dice_liver = (2.0 * s_wout / (s_u0sq + cnt_out + EPS)
                  + 2.0 * s_win / (s_u1sq + cnt_in + EPS))
    dice_inside = jnp.sum(2.0 * num_in / (den_pin + sum_ohin + EPS), axis=-1)
    dice_outside = jnp.sum(2.0 * num_out / (den_pout + sum_ohout + EPS), axis=-1)

    bce = -jnp.sum(bce_cls) / (N * C * H * W)    # F.binary_cross_entropy(..., reduce=True)
    pt = jnp.exp(-bce)
    f_loss = (1.0 - pt) ** 2 * bce               # torch.mean(F_loss) == F_loss

    return ((1.0 - dice / NUM_CLASSES) + f_loss
            + (1.0 - dice_liver / 2.0)
            + (1.0 - dice_inside / NUM_CLASSES)
            + (1.0 - dice_outside / NUM_CLASSES))


def _dice_loss_reference(pred, target, uout_l, liver):
    """Pure-JAX mirror of the PyTorch module (for a tolerance check)."""
    N, C, H, W = pred.shape
    organ_target = jnp.argmax(target, axis=1)
    background = jnp.sum(target, axis=1) == 0
    organ_target = jnp.where(background, 3, organ_target)
    organ_target = organ_target + 1
    organ_target = jnp.where(organ_target == 4, 0, organ_target)
    oh = jnp.transpose(jax.nn.one_hot(organ_target, C, dtype=jnp.float32),
                       (0, 3, 1, 2))
    dice = 0.0
    for c in range(C):
        num = jnp.sum(pred[:, c] * oh[:, c], axis=(1, 2))
        den = (jnp.sum(pred[:, c] ** 2, axis=(1, 2))
               + jnp.sum(oh[:, c] ** 2, axis=(1, 2)) + EPS)
        dice += 2.0 * num / den
    liv_oh = jnp.transpose(jax.nn.one_hot(liver.astype(jnp.int32), 2,
                                          dtype=jnp.float32), (0, 3, 1, 2))
    dice_liver = 0.0
    for c in range(2):
        num = jnp.sum(uout_l[:, c] * liv_oh[:, c], axis=(1, 2))
        den = (jnp.sum(uout_l[:, c] ** 2, axis=(1, 2))
               + jnp.sum(liv_oh[:, c] ** 2, axis=(1, 2)) + EPS)
        dice_liver += 2.0 * num / den
    t_in = oh * liv_oh[:, 1:2]
    t_out = oh * liv_oh[:, 0:1]
    p_in = pred * uout_l[:, 1:2]
    p_out = pred * uout_l[:, 0:1]
    dice_inside = 0.0
    dice_outside = 0.0
    for c in range(C):
        dice_inside += 2.0 * jnp.sum(p_in[:, c] * t_in[:, c], axis=(1, 2)) / (
            jnp.sum(p_in[:, c] ** 2, axis=(1, 2))
            + jnp.sum(t_in[:, c] ** 2, axis=(1, 2)) + EPS)
        dice_outside += 2.0 * jnp.sum(p_out[:, c] * t_out[:, c], axis=(1, 2)) / (
            jnp.sum(p_out[:, c] ** 2, axis=(1, 2))
            + jnp.sum(t_out[:, c] ** 2, axis=(1, 2)) + EPS)
    logp = jnp.maximum(jnp.log(pred), -100.0)
    log1mp = jnp.maximum(jnp.log(1.0 - pred), -100.0)
    bce = -jnp.mean(oh * logp + (1.0 - oh) * log1mp)
    pt = jnp.exp(-bce)
    f_loss = (1.0 - pt) ** 2 * bce
    return ((1.0 - dice / C) + f_loss + (1.0 - dice_liver / 2.0)
            + (1.0 - dice_inside / C) + (1.0 - dice_outside / C))


if __name__ == "__main__":
    key = jax.random.PRNGKey(0)
    k1, k2, k3, k4 = jax.random.split(key, 4)

    N, H, W = 2, 16, 16
    # pred must lie in (0,1) for binary_cross_entropy
    pred = jax.nn.sigmoid(jax.random.normal(k1, (N, NUM_CLASSES, H, W), jnp.float32))
    # target: 3 binary organ channels (argmax over them gives classes 0..2)
    target = (jax.random.uniform(k2, (N, NUM_BINARY, H, W)) > 0.7).astype(jnp.float32)
    # uout_l: 2-channel liver-branch prediction in (0,1)
    uout_l = jax.nn.softmax(jax.random.normal(k3, (N, 2, H, W), jnp.float32), axis=1)
    # liver: {0,1} mask (native int32 -- converted inside the kernel)
    liver = (jax.random.uniform(k4, (N, H, W)) > 0.5).astype(jnp.int32)

    loss = dice_loss(pred, target, uout_l, liver)
    jax.block_until_ready(loss)
    assert loss.shape == (N,)

    ref = _dice_loss_reference(pred, target, uout_l, liver)
    max_err = float(jnp.max(jnp.abs(loss - ref)))
    assert max_err < 1e-3, f"mismatch vs reference: {max_err}"
    print("KERNEL_OK")
</pallas_src>

<mosaic_0001>
module attributes {stable_mosaic.version = 11 : i64} {
  func.func @_dice_sums_kernel(%arg0: i32, %arg1: i32, %arg2: memref<1x4x2x128xf32, #tpu.memory_space<vmem>>, %arg3: memref<1x3x2x128xf32, #tpu.memory_space<vmem>>, %arg4: memref<1x2x2x128xf32, #tpu.memory_space<vmem>>, %arg5: memref<1x1x2x128xi32, #tpu.memory_space<vmem>>, %arg6: memref<1x1x128xf32, #tpu.memory_space<vmem>>) attributes {dimension_semantics = [#tpu.dimension_semantics<parallel>, #tpu.dimension_semantics<arbitrary>], iteration_bounds = array<i64: 2, 1>, scalar_prefetch = 0 : i64, scratch_operands = 0 : i64, tpu.core_type = #tpu.core_type<tc>, window_params = [{transform_indices = @transform_0, window_bounds = array<i64: 1, 4, 2, 128>}, {transform_indices = @transform_1, window_bounds = array<i64: 1, 3, 2, 128>}, {transform_indices = @transform_2, window_bounds = array<i64: 1, 2, 2, 128>}, {transform_indices = @transform_3, window_bounds = array<i64: 1, 1, 2, 128>}, {transform_indices = @transform_4, window_bounds = array<i64: 1, 1, 128>}]} {
    %c0_i32 = arith.constant 0 : i32
    %0 = arith.cmpi eq, %arg1, %c0_i32 : i32
    %1 = arith.extui %0 : i1 to i32
    %c0_i32_0 = arith.constant 0 : i32
    %2 = arith.cmpi ne, %1, %c0_i32_0 : i32
    scf.if %2 {
      %cst_160 = arith.constant 0.000000e+00 : f32
      %452 = vector.broadcast %cst_160 : f32 to vector<1x1x128xf32>
      %c0_161 = arith.constant 0 : index
      %c0_162 = arith.constant 0 : index
      %c0_163 = arith.constant 0 : index
      %453 = vector.load %arg6[%c0_161, %c0_162, %c0_163] : memref<1x1x128xf32, #tpu.memory_space<vmem>>, vector<1x1x128xf32>
      tpu.vector_store %arg6[%c0_161, %c0_162, %c0_163], %452 {strides = array<i32>} : memref<1x1x128xf32, #tpu.memory_space<vmem>>, vector<1x1x128xf32>,
    } else {
    }
    %c0 = arith.constant 0 : index
    %c0_1 = arith.constant 0 : index
    %c0_2 = arith.constant 0 : index
    %c0_3 = arith.constant 0 : index
    %3 = vector.load %arg3[%c0, %c0_1, %c0_2, %c0_3] : memref<1x3x2x128xf32, #tpu.memory_space<vmem>>, vector<1x1x2x128xf32>
    %4 = vector.shape_cast %3 : vector<1x1x2x128xf32> to vector<1x2x128xf32>
    %c0_4 = arith.constant 0 : index
    %c1 = arith.constant 1 : index
    %c0_5 = arith.constant 0 : index
    %c0_6 = arith.constant 0 : index
    %5 = vector.load %arg3[%c0_4, %c1, %c0_5, %c0_6] : memref<1x3x2x128xf32, #tpu.memory_space<vmem>>, vector<1x1x2x128xf32>
    %6 = vector.shape_cast %5 : vector<1x1x2x128xf32> to vector<1x2x128xf32>
    %c0_7 = arith.constant 0 : index
    %c2 = arith.constant 2 : index
    %c0_8 = arith.constant 0 : index
    %c0_9 = arith.constant 0 : index
    %7 = vector.load %arg3[%c0_7, %c2, %c0_8, %c0_9] : memref<1x3x2x128xf32, #tpu.memory_space<vmem>>, vector<1x1x2x128xf32>
    %8 = vector.shape_cast %7 : vector<1x1x2x128xf32> to vector<1x2x128xf32>
    %9 = arith.addf %4, %6 : vector<1x2x128xf32>
    %10 = arith.addf %9, %8 : vector<1x2x128xf32>
    %cst = arith.constant 0.000000e+00 : f32
    %11 = vector.broadcast %cst : f32 to vector<1x2x128xf32>
    %12 = arith.cmpf oeq, %10, %11 : vector<1x2x128xf32>
    %13 = arith.cmpf oge, %4, %6 : vector<1x2x128xf32>
    %14 = arith.cmpf oge, %4, %8 : vector<1x2x128xf32>
    %15 = arith.andi %13, %14 : vector<1x2x128xi1>
    %16 = arith.cmpf oge, %6, %8 : vector<1x2x128xf32>
    %c2_i32 = arith.constant 2 : i32
    %c3_i32 = arith.constant 3 : i32
    %17 = vector.broadcast %c2_i32 : i32 to vector<1x2x128xi32>
    %18 = vector.broadcast %c3_i32 : i32 to vector<1x2x128xi32>
    %19 = arith.select %16, %17, %18 : vector<1x2x128xi1>, vector<1x2x128xi32>
    %c1_i32 = arith.constant 1 : i32
    %20 = vector.broadcast %c1_i32 : i32 to vector<1x2x128xi32>
    %21 = arith.select %15, %20, %19 : vector<1x2x128xi1>, vector<1x2x128xi32>
    %c0_i32_10 = arith.constant 0 : i32
    %22 = vector.broadcast %c0_i32_10 : i32 to vector<1x2x128xi32>
    %23 = arith.select %12, %22, %21 : vector<1x2x128xi1>, vector<1x2x128xi32>
    %c0_11 = arith.constant 0 : index
    %c0_12 = arith.constant 0 : index
    %c0_13 = arith.constant 0 : index
    %c0_14 = arith.constant 0 : index
    %24 = vector.load %arg5[%c0_11, %c0_12, %c0_13, %c0_14] : memref<1x1x2x128xi32, #tpu.memory_space<vmem>>, vector<1x1x2x128xi32>
    %25 = vector.shape_cast %24 : vector<1x1x2x128xi32> to vector<1x2x128xi32>
    %c0_i32_15 = arith.constant 0 : i32
    %26 = vector.broadcast %c0_i32_15 : i32 to vector<1x2x128xi32>
    %27 = arith.cmpi ne, %25, %26 : vector<1x2x128xi32>
    %c0_16 = arith.constant 0 : index
    %c0_17 = arith.constant 0 : index
    %c0_18 = arith.constant 0 : index
    %c0_19 = arith.constant 0 : index
    %28 = vector.load %arg4[%c0_16, %c0_17, %c0_18, %c0_19] : memref<1x2x2x128xf32, #tpu.memory_space<vmem>>, vector<1x1x2x128xf32>
    %29 = vector.shape_cast %28 : vector<1x1x2x128xf32> to vector<1x2x128xf32>
    %c0_20 = arith.constant 0 : index
    %c1_21 = arith.constant 1 : index
    %c0_22 = arith.constant 0 : index
    %c0_23 = arith.constant 0 : index
    %30 = vector.load %arg4[%c0_20, %c1_21, %c0_22, %c0_23] : memref<1x2x2x128xf32, #tpu.memory_space<vmem>>, vector<1x1x2x128xf32>
    %31 = vector.shape_cast %30 : vector<1x1x2x128xf32> to vector<1x2x128xf32>
    %32 = arith.mulf %31, %31 : vector<1x2x128xf32>
    %33 = arith.mulf %29, %29 : vector<1x2x128xf32>
    %cst_24 = arith.constant 0.000000e+00 : f32
    %34 = vector.broadcast %cst_24 : f32 to vector<1x2x128xf32>
    %35 = arith.select %27, %31, %34 : vector<1x2x128xi1>, vector<1x2x128xf32>
    %cst_25 = arith.constant 0.000000e+00 : f32
    %36 = vector.broadcast %cst_25 : f32 to vector<1x2x128xf32>
    %37 = arith.select %27, %36, %29 : vector<1x2x128xi1>, vector<1x2x128xf32>
    %cst_26 = arith.constant dense<0.000000e+00> : vector<1x2xf32>
    %38 = vector.multi_reduction <add>, %35, %cst_26 [2] : vector<1x2x128xf32> to vector<1x2xf32>
    %39 = vector.shape_cast %38 : vector<1x2xf32> to vector<1x2x1xf32>
    %cst_27 = arith.constant dense<0.000000e+00> : vector<1x1xf32>
    %40 = vector.multi_reduction <add>, %39, %cst_27 [1] : vector<1x2x1xf32> to vector<1x1xf32>
    %cst_28 = arith.constant dense<0.000000e+00> : vector<1x2xf32>
    %41 = vector.multi_reduction <add>, %32, %cst_28 [2] : vector<1x2x128xf32> to vector<1x2xf32>
    %42 = vector.shape_cast %41 : vector<1x2xf32> to vector<1x2x1xf32>
    %cst_29 = arith.constant dense<0.000000e+00> : vector<1x1xf32>
    %43 = vector.multi_reduction <add>, %42, %cst_29 [1] : vector<1x2x1xf32> to vector<1x1xf32>
    %cst_30 = arith.constant dense<0.000000e+00> : vector<1x2xf32>
    %44 = vector.multi_reduction <add>, %37, %cst_30 [2] : vector<1x2x128xf32> to vector<1x2xf32>
    %45 = vector.shape_cast %44 : vector<1x2xf32> to vector<1x2x1xf32>
    %cst_31 = arith.constant dense<0.000000e+00> : vector<1x1xf32>
    %46 = vector.multi_reduction <add>, %45, %cst_31 [1] : vector<1x2x1xf32> to vector<1x1xf32>
    %cst_32 = arith.constant dense<0.000000e+00> : vector<1x2xf32>
    %47 = vector.multi_reduction <add>, %33, %cst_32 [2] : vector<1x2x128xf32> to vector<1x2xf32>
    %48 = vector.shape_cast %47 : vector<1x2xf32> to vector<1x2x1xf32>
    %cst_33 = arith.constant dense<0.000000e+00> : vector<1x1xf32>
    %49 = vector.multi_reduction <add>, %48, %cst_33 [1] : vector<1x2x1xf32> to vector<1x1xf32>
    %c0_i32_34 = arith.constant 0 : i32
    %50 = vector.broadcast %c0_i32_34 : i32 to vector<1x2x128xi32>
    %51 = arith.cmpi eq, %23, %50 : vector<1x2x128xi32>
    %c0_35 = arith.constant 0 : index
    %c0_36 = arith.constant 0 : index
    %c0_37 = arith.constant 0 : index
    %c0_38 = arith.constant 0 : index
    %52 = vector.load %arg2[%c0_35, %c0_36, %c0_37, %c0_38] : memref<1x4x2x128xf32, #tpu.memory_space<vmem>>, vector<1x1x2x128xf32>
    %53 = vector.shape_cast %52 : vector<1x1x2x128xf32> to vector<1x2x128xf32>
    %cst_39 = arith.constant 0.000000e+00 : f32
    %54 = vector.broadcast %cst_39 : f32 to vector<1x2x128xf32>
    %55 = arith.select %51, %53, %54 : vector<1x2x128xi1>, vector<1x2x128xf32>
    %56 = arith.mulf %53, %53 : vector<1x2x128xf32>
    %cst_40 = arith.constant 1.000000e+00 : f32
    %cst_41 = arith.constant 0.000000e+00 : f32
    %57 = vector.broadcast %cst_40 : f32 to vector<1x2x128xf32>
    %58 = vector.broadcast %cst_41 : f32 to vector<1x2x128xf32>
    %59 = arith.select %51, %57, %58 : vector<1x2x128xi1>, vector<1x2x128xf32>
    %cst_42 = arith.constant dense<0.000000e+00> : vector<1x2xf32>
    %60 = vector.multi_reduction <add>, %55, %cst_42 [2] : vector<1x2x128xf32> to vector<1x2xf32>
    %61 = vector.shape_cast %60 : vector<1x2xf32> to vector<1x2x1xf32>
    %cst_43 = arith.constant dense<0.000000e+00> : vector<1x1xf32>
    %62 = vector.multi_reduction <add>, %61, %cst_43 [1] : vector<1x2x1xf32> to vector<1x1xf32>
    %cst_44 = arith.constant dense<0.000000e+00> : vector<1x2xf32>
    %63 = vector.multi_reduction <add>, %56, %cst_44 [2] : vector<1x2x128xf32> to vector<1x2xf32>
    %64 = vector.shape_cast %63 : vector<1x2xf32> to vector<1x2x1xf32>
    %cst_45 = arith.constant dense<0.000000e+00> : vector<1x1xf32>
    %65 = vector.multi_reduction <add>, %64, %cst_45 [1] : vector<1x2x1xf32> to vector<1x1xf32>
    %cst_46 = arith.constant dense<0.000000e+00> : vector<1x2xf32>
    %66 = vector.multi_reduction <add>, %59, %cst_46 [2] : vector<1x2x128xf32> to vector<1x2xf32>
    %67 = vector.shape_cast %66 : vector<1x2xf32> to vector<1x2x1xf32>
    %cst_47 = arith.constant dense<0.000000e+00> : vector<1x1xf32>
    %68 = vector.multi_reduction <add>, %67, %cst_47 [1] : vector<1x2x1xf32> to vector<1x1xf32>
    %cst_48 = arith.constant 0.000000e+00 : f32
    %69 = vector.broadcast %cst_48 : f32 to vector<1x2x128xf32>
    %70 = arith.select %27, %59, %69 : vector<1x2x128xi1>, vector<1x2x128xf32>
    %cst_49 = arith.constant dense<0.000000e+00> : vector<1x2xf32>
    %71 = vector.multi_reduction <add>, %70, %cst_49 [2] : vector<1x2x128xf32> to vector<1x2xf32>
    %72 = vector.shape_cast %71 : vector<1x2xf32> to vector<1x2x1xf32>
    %cst_50 = arith.constant dense<0.000000e+00> : vector<1x1xf32>
    %73 = vector.multi_reduction <add>, %72, %cst_50 [1] : vector<1x2x1xf32> to vector<1x1xf32>
    %74 = arith.mulf %55, %35 : vector<1x2x128xf32>
    %cst_51 = arith.constant dense<0.000000e+00> : vector<1x2xf32>
    %75 = vector.multi_reduction <add>, %74, %cst_51 [2] : vector<1x2x128xf32> to vector<1x2xf32>
    %76 = vector.shape_cast %75 : vector<1x2xf32> to vector<1x2x1xf32>
    %cst_52 = arith.constant dense<0.000000e+00> : vector<1x1xf32>
    %77 = vector.multi_reduction <add>, %76, %cst_52 [1] : vector<1x2x1xf32> to vector<1x1xf32>
    %78 = arith.mulf %56, %32 : vector<1x2x128xf32>
    %cst_53 = arith.constant dense<0.000000e+00> : vector<1x2xf32>
    %79 = vector.multi_reduction <add>, %78, %cst_53 [2] : vector<1x2x128xf32> to vector<1x2xf32>
    %80 = vector.shape_cast %79 : vector<1x2xf32> to vector<1x2x1xf32>
    %cst_54 = arith.constant dense<0.000000e+00> : vector<1x1xf32>
    %81 = vector.multi_reduction <add>, %80, %cst_54 [1] : vector<1x2x1xf32> to vector<1x1xf32>
    %82 = arith.mulf %55, %37 : vector<1x2x128xf32>
    %cst_55 = arith.constant dense<0.000000e+00> : vector<1x2xf32>
    %83 = vector.multi_reduction <add>, %82, %cst_55 [2] : vector<1x2x128xf32> to vector<1x2xf32>
    %84 = vector.shape_cast %83 : vector<1x2xf32> to vector<1x2x1xf32>
    %cst_56 = arith.constant dense<0.000000e+00> : vector<1x1xf32>
    %85 = vector.multi_reduction <add>, %84, %cst_56 [1] : vector<1x2x1xf32> to vector<1x1xf32>
    %86 = arith.mulf %56, %33 : vector<1x2x128xf32>
    %cst_57 = arith.constant dense<0.000000e+00> : vector<1x2xf32>
    %87 = vector.multi_reduction <add>, %86, %cst_57 [2] : vector<1x2x128xf32> to vector<1x2xf32>
    %88 = vector.shape_cast %87 : vector<1x2xf32> to vector<1x2x1xf32>
    %cst_58 = arith.constant dense<0.000000e+00> : vector<1x1xf32>
    %89 = vector.multi_reduction <add>, %88, %cst_58 [1] : vector<1x2x1xf32> to vector<1x1xf32>
    %cst_59 = arith.constant 1.000000e+00 : f32
    %90 = vector.broadcast %cst_59 : f32 to vector<1x2x128xf32>
    %91 = arith.subf %90, %53 : vector<1x2x128xf32>
    %92 = arith.select %51, %53, %91 : vector<1x2x128xi1>, vector<1x2x128xf32>
    %93 = math.log %92 : vector<1x2x128xf32>
    %cst_60 = arith.constant -1.000000e+02 : f32
    %94 = vector.broadcast %cst_60 : f32 to vector<1x2x128xf32>
    %95 = arith.maximumf %93, %94 : vector<1x2x128xf32>
    %cst_61 = arith.constant dense<0.000000e+00> : vector<1x2xf32>
    %96 = vector.multi_reduction <add>, %95, %cst_61 [2] : vector<1x2x128xf32> to vector<1x2xf32>
    %97 = vector.shape_cast %96 : vector<1x2xf32> to vector<1x2x1xf32>
    %cst_62 = arith.constant dense<0.000000e+00> : vector<1x1xf32>
    %98 = vector.multi_reduction <add>, %97, %cst_62 [1] : vector<1x2x1xf32> to vector<1x1xf32>
    %c1_i32_63 = arith.constant 1 : i32
    %99 = vector.broadcast %c1_i32_63 : i32 to vector<1x2x128xi32>
    %100 = arith.cmpi eq, %23, %99 : vector<1x2x128xi32>
    %c0_64 = arith.constant 0 : index
    %c1_65 = arith.constant 1 : index
    %c0_66 = arith.constant 0 : index
    %c0_67 = arith.constant 0 : index
    %101 = vector.load %arg2[%c0_64, %c1_65, %c0_66, %c0_67] : memref<1x4x2x128xf32, #tpu.memory_space<vmem>>, vector<1x1x2x128xf32>
    %102 = vector.shape_cast %101 : vector<1x1x2x128xf32> to vector<1x2x128xf32>
    %cst_68 = arith.constant 0.000000e+00 : f32
    %103 = vector.broadcast %cst_68 : f32 to vector<1x2x128xf32>
    %104 = arith.select %100, %102, %103 : vector<1x2x128xi1>, vector<1x2x128xf32>
    %105 = arith.mulf %102, %102 : vector<1x2x128xf32>
    %cst_69 = arith.constant 1.000000e+00 : f32
    %cst_70 = arith.constant 0.000000e+00 : f32
    %106 = vector.broadcast %cst_69 : f32 to vector<1x2x128xf32>
    %107 = vector.broadcast %cst_70 : f32 to vector<1x2x128xf32>
    %108 = arith.select %100, %106, %107 : vector<1x2x128xi1>, vector<1x2x128xf32>
    %cst_71 = arith.constant dense<0.000000e+00> : vector<1x2xf32>
    %109 = vector.multi_reduction <add>, %104, %cst_71 [2] : vector<1x2x128xf32> to vector<1x2xf32>
    %110 = vector.shape_cast %109 : vector<1x2xf32> to vector<1x2x1xf32>
    %cst_72 = arith.constant dense<0.000000e+00> : vector<1x1xf32>
    %111 = vector.multi_reduction <add>, %110, %cst_72 [1] : vector<1x2x1xf32> to vector<1x1xf32>
    %cst_73 = arith.constant dense<0.000000e+00> : vector<1x2xf32>
    %112 = vector.multi_reduction <add>, %105, %cst_73 [2] : vector<1x2x128xf32> to vector<1x2xf32>
    %113 = vector.shape_cast %112 : vector<1x2xf32> to vector<1x2x1xf32>
    %cst_74 = arith.constant dense<0.000000e+00> : vector<1x1xf32>
    %114 = vector.multi_reduction <add>, %113, %cst_74 [1] : vector<1x2x1xf32> to vector<1x1xf32>
    %cst_75 = arith.constant dense<0.000000e+00> : vector<1x2xf32>
    %115 = vector.multi_reduction <add>, %108, %cst_75 [2] : vector<1x2x128xf32> to vector<1x2xf32>
    %116 = vector.shape_cast %115 : vector<1x2xf32> to vector<1x2x1xf32>
    %cst_76 = arith.constant dense<0.000000e+00> : vector<1x1xf32>
    %117 = vector.multi_reduction <add>, %116, %cst_76 [1] : vector<1x2x1xf32> to vector<1x1xf32>
    %cst_77 = arith.constant 0.000000e+00 : f32
    %118 = vector.broadcast %cst_77 : f32 to vector<1x2x128xf32>
    %119 = arith.select %27, %108, %118 : vector<1x2x128xi1>, vector<1x2x128xf32>
    %cst_78 = arith.constant dense<0.000000e+00> : vector<1x2xf32>
    %120 = vector.multi_reduction <add>, %119, %cst_78 [2] : vector<1x2x128xf32> to vector<1x2xf32>
    %121 = vector.shape_cast %120 : vector<1x2xf32> to vector<1x2x1xf32>
    %cst_79 = arith.constant dense<0.000000e+00> : vector<1x1xf32>
    %122 = vector.multi_reduction <add>, %121, %cst_79 [1] : vector<1x2x1xf32> to vector<1x1xf32>
    %123 = arith.mulf %104, %35 : vector<1x2x128xf32>
    %cst_80 = arith.constant dense<0.000000e+00> : vector<1x2xf32>
    %124 = vector.multi_reduction <add>, %123, %cst_80 [2] : vector<1x2x128xf32> to vector<1x2xf32>
    %125 = vector.shape_cast %124 : vector<1x2xf32> to vector<1x2x1xf32>
    %cst_81 = arith.constant dense<0.000000e+00> : vector<1x1xf32>
    %126 = vector.multi_reduction <add>, %125, %cst_81 [1] : vector<1x2x1xf32> to vector<1x1xf32>
    %127 = arith.mulf %105, %32 : vector<1x2x128xf32>
    %cst_82 = arith.constant dense<0.000000e+00> : vector<1x2xf32>
    %128 = vector.multi_reduction <add>, %127, %cst_82 [2] : vector<1x2x128xf32> to vector<1x2xf32>
    %129 = vector.shape_cast %128 : vector<1x2xf32> to vector<1x2x1xf32>
    %cst_83 = arith.constant dense<0.000000e+00> : vector<1x1xf32>
    %130 = vector.multi_reduction <add>, %129, %cst_83 [1] : vector<1x2x1xf32> to vector<1x1xf32>
    %131 = arith.mulf %104, %37 : vector<1x2x128xf32>
    %cst_84 = arith.constant dense<0.000000e+00> : vector<1x2xf32>
    %132 = vector.multi_reduction <add>, %131, %cst_84 [2] : vector<1x2x128xf32> to vector<1x2xf32>
    %133 = vector.shape_cast %132 : vector<1x2xf32> to vector<1x2x1xf32>
    %cst_85 = arith.constant dense<0.000000e+00> : vector<1x1xf32>
    %134 = vector.multi_reduction <add>, %133, %cst_85 [1] : vector<1x2x1xf32> to vector<1x1xf32>
    %135 = arith.mulf %105, %33 : vector<1x2x128xf32>
    %cst_86 = arith.constant dense<0.000000e+00> : vector<1x2xf32>
    %136 = vector.multi_reduction <add>, %135, %cst_86 [2] : vector<1x2x128xf32> to vector<1x2xf32>
    %137 = vector.shape_cast %136 : vector<1x2xf32> to vector<1x2x1xf32>
    %cst_87 = arith.constant dense<0.000000e+00> : vector<1x1xf32>
    %138 = vector.multi_reduction <add>, %137, %cst_87 [1] : vector<1x2x1xf32> to vector<1x1xf32>
    %cst_88 = arith.constant 1.000000e+00 : f32
    %139 = vector.broadcast %cst_88 : f32 to vector<1x2x128xf32>
    %140 = arith.subf %139, %102 : vector<1x2x128xf32>
    %141 = arith.select %100, %102, %140 : vector<1x2x128xi1>, vector<1x2x128xf32>
    %142 = math.log %141 : vector<1x2x128xf32>
    %cst_89 = arith.constant -1.000000e+02 : f32
    %143 = vector.broadcast %cst_89 : f32 to vector<1x2x128xf32>
    %144 = arith.maximumf %142, %143 : vector<1x2x128xf32>
    %cst_90 = arith.constant dense<0.000000e+00> : vector<1x2xf32>
    %145 = vector.multi_reduction <add>, %144, %cst_90 [2] : vector<1x2x128xf32> to vector<1x2xf32>
    %146 = vector.shape_cast %145 : vector<1x2xf32> to vector<1x2x1xf32>
    %cst_91 = arith.constant dense<0.000000e+00> : vector<1x1xf32>
    %147 = vector.multi_reduction <add>, %146, %cst_91 [1] : vector<1x2x1xf32> to vector<1x1xf32>
    %c2_i32_92 = arith.constant 2 : i32
    %148 = vector.broadcast %c2_i32_92 : i32 to vector<1x2x128xi32>
    %149 = arith.cmpi eq, %23, %148 : vector<1x2x128xi32>
    %c0_93 = arith.constant 0 : index
    %c2_94 = arith.constant 2 : index
    %c0_95 = arith.constant 0 : index
    %c0_96 = arith.constant 0 : index
    %150 = vector.load %arg2[%c0_93, %c2_94, %c0_95, %c0_96] : memref<1x4x2x128xf32, #tpu.memory_space<vmem>>, vector<1x1x2x128xf32>
    %151 = vector.shape_cast %150 : vector<1x1x2x128xf32> to vector<1x2x128xf32>
    %cst_97 = arith.constant 0.000000e+00 : f32
    %152 = vector.broadcast %cst_97 : f32 to vector<1x2x128xf32>
    %153 = arith.select %149, %151, %152 : vector<1x2x128xi1>, vector<1x2x128xf32>
    %154 = arith.mulf %151, %151 : vector<1x2x128xf32>
    %cst_98 = arith.constant 1.000000e+00 : f32
    %cst_99 = arith.constant 0.000000e+00 : f32
    %155 = vector.broadcast %cst_98 : f32 to vector<1x2x128xf32>
    %156 = vector.broadcast %cst_99 : f32 to vector<1x2x128xf32>
    %157 = arith.select %149, %155, %156 : vector<1x2x128xi1>, vector<1x2x128xf32>
    %cst_100 = arith.constant dense<0.000000e+00> : vector<1x2xf32>
    %158 = vector.multi_reduction <add>, %153, %cst_100 [2] : vector<1x2x128xf32> to vector<1x2xf32>
    %159 = vector.shape_cast %158 : vector<1x2xf32> to vector<1x2x1xf32>
    %cst_101 = arith.constant dense<0.000000e+00> : vector<1x1xf32>
    %160 = vector.multi_reduction <add>, %159, %cst_101 [1] : vector<1x2x1xf32> to vector<1x1xf32>
    %cst_102 = arith.constant dense<0.000000e+00> : vector<1x2xf32>
    %161 = vector.multi_reduction <add>, %154, %cst_102 [2] : vector<1x2x128xf32> to vector<1x2xf32>
    %162 = vector.shape_cast %161 : vector<1x2xf32> to vector<1x2x1xf32>
    %cst_103 = arith.constant dense<0.000000e+00> : vector<1x1xf32>
    %163 = vector.multi_reduction <add>, %162, %cst_103 [1] : vector<1x2x1xf32> to vector<1x1xf32>
    %cst_104 = arith.constant dense<0.000000e+00> : vector<1x2xf32>
    %164 = vector.multi_reduction <add>, %157, %cst_104 [2] : vector<1x2x128xf32> to vector<1x2xf32>
    %165 = vector.shape_cast %164 : vector<1x2xf32> to vector<1x2x1xf32>
    %cst_105 = arith.constant dense<0.000000e+00> : vector<1x1xf32>
    %166 = vector.multi_reduction <add>, %165, %cst_105 [1] : vector<1x2x1xf32> to vector<1x1xf32>
    %cst_106 = arith.constant 0.000000e+00 : f32
    %167 = vector.broadcast %cst_106 : f32 to vector<1x2x128xf32>
    %168 = arith.select %27, %157, %167 : vector<1x2x128xi1>, vector<1x2x128xf32>
    %cst_107 = arith.constant dense<0.000000e+00> : vector<1x2xf32>
    %169 = vector.multi_reduction <add>, %168, %cst_107 [2] : vector<1x2x128xf32> to vector<1x2xf32>
    %170 = vector.shape_cast %169 : vector<1x2xf32> to vector<1x2x1xf32>
    %cst_108 = arith.constant dense<0.000000e+00> : vector<1x1xf32>
    %171 = vector.multi_reduction <add>, %170, %cst_108 [1] : vector<1x2x1xf32> to vector<1x1xf32>
    %172 = arith.mulf %153, %35 : vector<1x2x128xf32>
    %cst_109 = arith.constant dense<0.000000e+00> : vector<1x2xf32>
    %173 = vector.multi_reduction <add>, %172, %cst_109 [2] : vector<1x2x128xf32> to vector<1x2xf32>
    %174 = vector.shape_cast %173 : vector<1x2xf32> to vector<1x2x1xf32>
    %cst_110 = arith.constant dense<0.000000e+00> : vector<1x1xf32>
    %175 = vector.multi_reduction <add>, %174, %cst_110 [1] : vector<1x2x1xf32> to vector<1x1xf32>
    %176 = arith.mulf %154, %32 : vector<1x2x128xf32>
    %cst_111 = arith.constant dense<0.000000e+00> : vector<1x2xf32>
    %177 = vector.multi_reduction <add>, %176, %cst_111 [2] : vector<1x2x128xf32> to vector<1x2xf32>
    %178 = vector.shape_cast %177 : vector<1x2xf32> to vector<1x2x1xf32>
    %cst_112 = arith.constant dense<0.000000e+00> : vector<1x1xf32>
    %179 = vector.multi_reduction <add>, %178, %cst_112 [1] : vector<1x2x1xf32> to vector<1x1xf32>
    %180 = arith.mulf %153, %37 : vector<1x2x128xf32>
    %cst_113 = arith.constant dense<0.000000e+00> : vector<1x2xf32>
    %181 = vector.multi_reduction <add>, %180, %cst_113 [2] : vector<1x2x128xf32> to vector<1x2xf32>
    %182 = vector.shape_cast %181 : vector<1x2xf32> to vector<1x2x1xf32>
    %cst_114 = arith.constant dense<0.000000e+00> : vector<1x1xf32>
    %183 = vector.multi_reduction <add>, %182, %cst_114 [1] : vector<1x2x1xf32> to vector<1x1xf32>
    %184 = arith.mulf %154, %33 : vector<1x2x128xf32>
    %cst_115 = arith.constant dense<0.000000e+00> : vector<1x2xf32>
    %185 = vector.multi_reduction <add>, %184, %cst_115 [2] : vector<1x2x128xf32> to vector<1x2xf32>
    %186 = vector.shape_cast %185 : vector<1x2xf32> to vector<1x2x1xf32>
    %cst_116 = arith.constant dense<0.000000e+00> : vector<1x1xf32>
    %187 = vector.multi_reduction <add>, %186, %cst_116 [1] : vector<1x2x1xf32> to vector<1x1xf32>
    %cst_117 = arith.constant 1.000000e+00 : f32
    %188 = vector.broadcast %cst_117 : f32 to vector<1x2x128xf32>
    %189 = arith.subf %188, %151 : vector<1x2x128xf32>
    %190 = arith.select %149, %151, %189 : vector<1x2x128xi1>, vector<1x2x128xf32>
    %191 = math.log %190 : vector<1x2x128xf32>
    %cst_118 = arith.constant -1.000000e+02 : f32
    %192 = vector.broadcast %cst_118 : f32 to vector<1x2x128xf32>
    %193 = arith.maximumf %191, %192 : vector<1x2x128xf32>
    %cst_119 = arith.constant dense<0.000000e+00> : vector<1x2xf32>
    %194 = vector.multi_reduction <add>, %193, %cst_119 [2] : vector<1x2x128xf32> to vector<1x2xf32>
    %195 = vector.shape_cast %194 : vector<1x2xf32> to vector<1x2x1xf32>
    %cst_120 = arith.constant dense<0.000000e+00> : vector<1x1xf32>
    %196 = vector.multi_reduction <add>, %195, %cst_120 [1] : vector<1x2x1xf32> to vector<1x1xf32>
    %c3_i32_121 = arith.constant 3 : i32
    %197 = vector.broadcast %c3_i32_121 : i32 to vector<1x2x128xi32>
    %198 = arith.cmpi eq, %23, %197 : vector<1x2x128xi32>
    %c0_122 = arith.constant 0 : index
    %c3 = arith.constant 3 : index
    %c0_123 = arith.constant 0 : index
    %c0_124 = arith.constant 0 : index
    %199 = vector.load %arg2[%c0_122, %c3, %c0_123, %c0_124] : memref<1x4x2x128xf32, #tpu.memory_space<vmem>>, vector<1x1x2x128xf32>
    %200 = vector.shape_cast %199 : vector<1x1x2x128xf32> to vector<1x2x128xf32>
    %cst_125 = arith.constant 0.000000e+00 : f32
    %201 = vector.broadcast %cst_125 : f32 to vector<1x2x128xf32>
    %202 = arith.select %198, %200, %201 : vector<1x2x128xi1>, vector<1x2x128xf32>
    %203 = arith.mulf %200, %200 : vector<1x2x128xf32>
    %cst_126 = arith.constant 1.000000e+00 : f32
    %cst_127 = arith.constant 0.000000e+00 : f32
    %204 = vector.broadcast %cst_126 : f32 to vector<1x2x128xf32>
    %205 = vector.broadcast %cst_127 : f32 to vector<1x2x128xf32>
    %206 = arith.select %198, %204, %205 : vector<1x2x128xi1>, vector<1x2x128xf32>
    %cst_128 = arith.constant dense<0.000000e+00> : vector<1x2xf32>
    %207 = vector.multi_reduction <add>, %202, %cst_128 [2] : vector<1x2x128xf32> to vector<1x2xf32>
    %208 = vector.shape_cast %207 : vector<1x2xf32> to vector<1x2x1xf32>
    %cst_129 = arith.constant dense<0.000000e+00> : vector<1x1xf32>
    %209 = vector.multi_reduction <add>, %208, %cst_129 [1] : vector<1x2x1xf32> to vector<1x1xf32>
    %cst_130 = arith.constant dense<0.000000e+00> : vector<1x2xf32>
    %210 = vector.multi_reduction <add>, %203, %cst_130 [2] : vector<1x2x128xf32> to vector<1x2xf32>
    %211 = vector.shape_cast %210 : vector<1x2xf32> to vector<1x2x1xf32>
    %cst_131 = arith.constant dense<0.000000e+00> : vector<1x1xf32>
    %212 = vector.multi_reduction <add>, %211, %cst_131 [1] : vector<1x2x1xf32> to vector<1x1xf32>
    %cst_132 = arith.constant dense<0.000000e+00> : vector<1x2xf32>
    %213 = vector.multi_reduction <add>, %206, %cst_132 [2] : vector<1x2x128xf32> to vector<1x2xf32>
    %214 = vector.shape_cast %213 : vector<1x2xf32> to vector<1x2x1xf32>
    %cst_133 = arith.constant dense<0.000000e+00> : vector<1x1xf32>
    %215 = vector.multi_reduction <add>, %214, %cst_133 [1] : vector<1x2x1xf32> to vector<1x1xf32>
    %cst_134 = arith.constant 0.000000e+00 : f32
    %216 = vector.broadcast %cst_134 : f32 to vector<1x2x128xf32>
    %217 = arith.select %27, %206, %216 : vector<1x2x128xi1>, vector<1x2x128xf32>
    %cst_135 = arith.constant dense<0.000000e+00> : vector<1x2xf32>
    %218 = vector.multi_reduction <add>, %217, %cst_135 [2] : vector<1x2x128xf32> to vector<1x2xf32>
    %219 = vector.shape_cast %218 : vector<1x2xf32> to vector<1x2x1xf32>
    %cst_136 = arith.constant dense<0.000000e+00> : vector<1x1xf32>
    %220 = vector.multi_reduction <add>, %219, %cst_136 [1] : vector<1x2x1xf32> to vector<1x1xf32>
    %221 = arith.mulf %202, %35 : vector<1x2x128xf32>
    %cst_137 = arith.constant dense<0.000000e+00> : vector<1x2xf32>
    %222 = vector.multi_reduction <add>, %221, %cst_137 [2] : vector<1x2x128xf32> to vector<1x2xf32>
    %223 = vector.shape_cast %222 : vector<1x2xf32> to vector<1x2x1xf32>
    %cst_138 = arith.constant dense<0.000000e+00> : vector<1x1xf32>
    %224 = vector.multi_reduction <add>, %223, %cst_138 [1] : vector<1x2x1xf32> to vector<1x1xf32>
    %225 = arith.mulf %203, %32 : vector<1x2x128xf32>
    %cst_139 = arith.constant dense<0.000000e+00> : vector<1x2xf32>
    %226 = vector.multi_reduction <add>, %225, %cst_139 [2] : vector<1x2x128xf32> to vector<1x2xf32>
    %227 = vector.shape_cast %226 : vector<1x2xf32> to vector<1x2x1xf32>
    %cst_140 = arith.constant dense<0.000000e+00> : vector<1x1xf32>
    %228 = vector.multi_reduction <add>, %227, %cst_140 [1] : vector<1x2x1xf32> to vector<1x1xf32>
    %229 = arith.mulf %202, %37 : vector<1x2x128xf32>
    %cst_141 = arith.constant dense<0.000000e+00> : vector<1x2xf32>
    %230 = vector.multi_reduction <add>, %229, %cst_141 [2] : vector<1x2x128xf32> to vector<1x2xf32>
    %231 = vector.shape_cast %230 : vector<1x2xf32> to vector<1x2x1xf32>
    %cst_142 = arith.constant dense<0.000000e+00> : vector<1x1xf32>
    %232 = vector.multi_reduction <add>, %231, %cst_142 [1] : vector<1x2x1xf32> to vector<1x1xf32>
    %233 = arith.mulf %203, %33 : vector<1x2x128xf32>
    %cst_143 = arith.constant dense<0.000000e+00> : vector<1x2xf32>
    %234 = vector.multi_reduction <add>, %233, %cst_143 [2] : vector<1x2x128xf32> to vector<1x2xf32>
    %235 = vector.shape_cast %234 : vector<1x2xf32> to vector<1x2x1xf32>
    %cst_144 = arith.constant dense<0.000000e+00> : vector<1x1xf32>
    %236 = vector.multi_reduction <add>, %235, %cst_144 [1] : vector<1x2x1xf32> to vector<1x1xf32>
    %cst_145 = arith.constant 1.000000e+00 : f32
    %237 = vector.broadcast %cst_145 : f32 to vector<1x2x128xf32>
    %238 = arith.subf %237, %200 : vector<1x2x128xf32>
    %239 = arith.select %198, %200, %238 : vector<1x2x128xi1>, vector<1x2x128xf32>
    %240 = math.log %239 : vector<1x2x128xf32>
    %cst_146 = arith.constant -1.000000e+02 : f32
    %241 = vector.broadcast %cst_146 : f32 to vector<1x2x128xf32>
    %242 = arith.maximumf %240, %241 : vector<1x2x128xf32>
    %cst_147 = arith.constant dense<0.000000e+00> : vector<1x2xf32>
    %243 = vector.multi_reduction <add>, %242, %cst_147 [2] : vector<1x2x128xf32> to vector<1x2xf32>
    %244 = vector.shape_cast %243 : vector<1x2xf32> to vector<1x2x1xf32>
    %cst_148 = arith.constant dense<0.000000e+00> : vector<1x1xf32>
    %245 = vector.multi_reduction <add>, %244, %cst_148 [1] : vector<1x2x1xf32> to vector<1x1xf32>
    %246 = tpu.iota {dimensions = array<i32: 1>} : vector<1x128xi32>
    %cst_149 = arith.constant 0.000000e+00 : f32
    %247 = vector.broadcast %cst_149 : f32 to vector<1x128xf32>
    %c0_i32_150 = arith.constant 0 : i32
    %248 = vector.broadcast %c0_i32_150 : i32 to vector<1x128xi32>
    %249 = arith.cmpi eq, %246, %248 : vector<1x128xi32>
    %250 = vector.shape_cast %62 : vector<1x1xf32> to vector<1x1xf32>
    %251 = vector.broadcast %250 : vector<1x1xf32> to vector<1x128xf32>
    %252 = arith.select %249, %251, %247 : vector<1x128xi1>, vector<1x128xf32>
    %c1_i32_151 = arith.constant 1 : i32
    %253 = vector.broadcast %c1_i32_151 : i32 to vector<1x128xi32>
    %254 = arith.cmpi eq, %246, %253 : vector<1x128xi32>
    %255 = vector.shape_cast %111 : vector<1x1xf32> to vector<1x1xf32>
    %256 = vector.broadcast %255 : vector<1x1xf32> to vector<1x128xf32>
    %257 = arith.select %254, %256, %252 : vector<1x128xi1>, vector<1x128xf32>
    %c2_i32_152 = arith.constant 2 : i32
    %258 = vector.broadcast %c2_i32_152 : i32 to vector<1x128xi32>
    %259 = arith.cmpi eq, %246, %258 : vector<1x128xi32>
    %260 = vector.shape_cast %160 : vector<1x1xf32> to vector<1x1xf32>
    %261 = vector.broadcast %260 : vector<1x1xf32> to vector<1x128xf32>
    %262 = arith.select %259, %261, %257 : vector<1x128xi1>, vector<1x128xf32>
    %c3_i32_153 = arith.constant 3 : i32
    %263 = vector.broadcast %c3_i32_153 : i32 to vector<1x128xi32>
    %264 = arith.cmpi eq, %246, %263 : vector<1x128xi32>
    %265 = vector.shape_cast %209 : vector<1x1xf32> to vector<1x1xf32>
    %266 = vector.broadcast %265 : vector<1x1xf32> to vector<1x128xf32>
    %267 = arith.select %264, %266, %262 : vector<1x128xi1>, vector<1x128xf32>
    %c4_i32 = arith.constant 4 : i32
    %268 = vector.broadcast %c4_i32 : i32 to vector<1x128xi32>
    %269 = arith.cmpi eq, %246, %268 : vector<1x128xi32>
    %270 = vector.shape_cast %65 : vector<1x1xf32> to vector<1x1xf32>
    %271 = vector.broadcast %270 : vector<1x1xf32> to vector<1x128xf32>
    %272 = arith.select %269, %271, %267 : vector<1x128xi1>, vector<1x128xf32>
    %c5_i32 = arith.constant 5 : i32
    %273 = vector.broadcast %c5_i32 : i32 to vector<1x128xi32>
    %274 = arith.cmpi eq, %246, %273 : vector<1x128xi32>
    %275 = vector.shape_cast %114 : vector<1x1xf32> to vector<1x1xf32>
    %276 = vector.broadcast %275 : vector<1x1xf32> to vector<1x128xf32>
    %277 = arith.select %274, %276, %272 : vector<1x128xi1>, vector<1x128xf32>
    %c6_i32 = arith.constant 6 : i32
    %278 = vector.broadcast %c6_i32 : i32 to vector<1x128xi32>
    %279 = arith.cmpi eq, %246, %278 : vector<1x128xi32>
    %280 = vector.shape_cast %163 : vector<1x1xf32> to vector<1x1xf32>
    %281 = vector.broadcast %280 : vector<1x1xf32> to vector<1x128xf32>
    %282 = arith.select %279, %281, %277 : vector<1x128xi1>, vector<1x128xf32>
    %c7_i32 = arith.constant 7 : i32
    %283 = vector.broadcast %c7_i32 : i32 to vector<1x128xi32>
    %284 = arith.cmpi eq, %246, %283 : vector<1x128xi32>
    %285 = vector.shape_cast %212 : vector<1x1xf32> to vector<1x1xf32>
    %286 = vector.broadcast %285 : vector<1x1xf32> to vector<1x128xf32>
    %287 = arith.select %284, %286, %282 : vector<1x128xi1>, vector<1x128xf32>
    %c8_i32 = arith.constant 8 : i32
    %288 = vector.broadcast %c8_i32 : i32 to vector<1x128xi32>
    %289 = arith.cmpi eq, %246, %288 : vector<1x128xi32>
    %290 = vector.shape_cast %68 : vector<1x1xf32> to vector<1x1xf32>
    %291 = vector.broadcast %290 : vector<1x1xf32> to vector<1x128xf32>
    %292 = arith.select %289, %291, %287 : vector<1x128xi1>, vector<1x128xf32>
    %c9_i32 = arith.constant 9 : i32
    %293 = vector.broadcast %c9_i32 : i32 to vector<1x128xi32>
    %294 = arith.cmpi eq, %246, %293 : vector<1x128xi32>
    %295 = vector.shape_cast %117 : vector<1x1xf32> to vector<1x1xf32>
    %296 = vector.broadcast %295 : vector<1x1xf32> to vector<1x128xf32>
    %297 = arith.select %294, %296, %292 : vector<1x128xi1>, vector<1x128xf32>
    %c10_i32 = arith.constant 10 : i32
    %298 = vector.broadcast %c10_i32 : i32 to vector<1x128xi32>
    %299 = arith.cmpi eq, %246, %298 : vector<1x128xi32>
    %300 = vector.shape_cast %166 : vector<1x1xf32> to vector<1x1xf32>
    %301 = vector.broadcast %300 : vector<1x1xf32> to vector<1x128xf32>
    %302 = arith.select %299, %301, %297 : vector<1x128xi1>, vector<1x128xf32>
    %c11_i32 = arith.constant 11 : i32
    %303 = vector.broadcast %c11_i32 : i32 to vector<1x128xi32>
    %304 = arith.cmpi eq, %246, %303 : vector<1x128xi32>
    %305 = vector.shape_cast %215 : vector<1x1xf32> to vector<1x1xf32>
    %306 = vector.broadcast %305 : vector<1x1xf32> to vector<1x128xf32>
    %307 = arith.select %304, %306, %302 : vector<1x128xi1>, vector<1x128xf32>
    %c12_i32 = arith.constant 12 : i32
    %308 = vector.broadcast %c12_i32 : i32 to vector<1x128xi32>
    %309 = arith.cmpi eq, %246, %308 : vector<1x128xi32>
    %310 = vector.shape_cast %73 : vector<1x1xf32> to vector<1x1xf32>
    %311 = vector.broadcast %310 : vector<1x1xf32> to vector<1x128xf32>
    %312 = arith.select %309, %311, %307 : vector<1x128xi1>, vector<1x128xf32>
    %c13_i32 = arith.constant 13 : i32
    %313 = vector.broadcast %c13_i32 : i32 to vector<1x128xi32>
    %314 = arith.cmpi eq, %246, %313 : vector<1x128xi32>
    %315 = vector.shape_cast %122 : vector<1x1xf32> to vector<1x1xf32>
    %316 = vector.broadcast %315 : vector<1x1xf32> to vector<1x128xf32>
    %317 = arith.select %314, %316, %312 : vector<1x128xi1>, vector<1x128xf32>
    %c14_i32 = arith.constant 14 : i32
    %318 = vector.broadcast %c14_i32 : i32 to vector<1x128xi32>
    %319 = arith.cmpi eq, %246, %318 : vector<1x128xi32>
    %320 = vector.shape_cast %171 : vector<1x1xf32> to vector<1x1xf32>
    %321 = vector.broadcast %320 : vector<1x1xf32> to vector<1x128xf32>
    %322 = arith.select %319, %321, %317 : vector<1x128xi1>, vector<1x128xf32>
    %c15_i32 = arith.constant 15 : i32
    %323 = vector.broadcast %c15_i32 : i32 to vector<1x128xi32>
    %324 = arith.cmpi eq, %246, %323 : vector<1x128xi32>
    %325 = vector.shape_cast %220 : vector<1x1xf32> to vector<1x1xf32>
    %326 = vector.broadcast %325 : vector<1x1xf32> to vector<1x128xf32>
    %327 = arith.select %324, %326, %322 : vector<1x128xi1>, vector<1x128xf32>
    %c16_i32 = arith.constant 16 : i32
    %328 = vector.broadcast %c16_i32 : i32 to vector<1x128xi32>
    %329 = arith.cmpi eq, %246, %328 : vector<1x128xi32>
    %330 = vector.shape_cast %77 : vector<1x1xf32> to vector<1x1xf32>
    %331 = vector.broadcast %330 : vector<1x1xf32> to vector<1x128xf32>
    %332 = arith.select %329, %331, %327 : vector<1x128xi1>, vector<1x128xf32>
    %c17_i32 = arith.constant 17 : i32
    %333 = vector.broadcast %c17_i32 : i32 to vector<1x128xi32>
    %334 = arith.cmpi eq, %246, %333 : vector<1x128xi32>
    %335 = vector.shape_cast %126 : vector<1x1xf32> to vector<1x1xf32>
    %336 = vector.broadcast %335 : vector<1x1xf32> to vector<1x128xf32>
    %337 = arith.select %334, %336, %332 : vector<1x128xi1>, vector<1x128xf32>
    %c18_i32 = arith.constant 18 : i32
    %338 = vector.broadcast %c18_i32 : i32 to vector<1x128xi32>
    %339 = arith.cmpi eq, %246, %338 : vector<1x128xi32>
    %340 = vector.shape_cast %175 : vector<1x1xf32> to vector<1x1xf32>
    %341 = vector.broadcast %340 : vector<1x1xf32> to vector<1x128xf32>
    %342 = arith.select %339, %341, %337 : vector<1x128xi1>, vector<1x128xf32>
    %c19_i32 = arith.constant 19 : i32
    %343 = vector.broadcast %c19_i32 : i32 to vector<1x128xi32>
    %344 = arith.cmpi eq, %246, %343 : vector<1x128xi32>
    %345 = vector.shape_cast %224 : vector<1x1xf32> to vector<1x1xf32>
    %346 = vector.broadcast %345 : vector<1x1xf32> to vector<1x128xf32>
    %347 = arith.select %344, %346, %342 : vector<1x128xi1>, vector<1x128xf32>
    %c20_i32 = arith.constant 20 : i32
    %348 = vector.broadcast %c20_i32 : i32 to vector<1x128xi32>
    %349 = arith.cmpi eq, %246, %348 : vector<1x128xi32>
    %350 = vector.shape_cast %81 : vector<1x1xf32> to vector<1x1xf32>
    %351 = vector.broadcast %350 : vector<1x1xf32> to vector<1x128xf32>
    %352 = arith.select %349, %351, %347 : vector<1x128xi1>, vector<1x128xf32>
    %c21_i32 = arith.constant 21 : i32
    %353 = vector.broadcast %c21_i32 : i32 to vector<1x128xi32>
    %354 = arith.cmpi eq, %246, %353 : vector<1x128xi32>
    %355 = vector.shape_cast %130 : vector<1x1xf32> to vector<1x1xf32>
    %356 = vector.broadcast %355 : vector<1x1xf32> to vector<1x128xf32>
    %357 = arith.select %354, %356, %352 : vector<1x128xi1>, vector<1x128xf32>
    %c22_i32 = arith.constant 22 : i32
    %358 = vector.broadcast %c22_i32 : i32 to vector<1x128xi32>
    %359 = arith.cmpi eq, %246, %358 : vector<1x128xi32>
    %360 = vector.shape_cast %179 : vector<1x1xf32> to vector<1x1xf32>
    %361 = vector.broadcast %360 : vector<1x1xf32> to vector<1x128xf32>
    %362 = arith.select %359, %361, %357 : vector<1x128xi1>, vector<1x128xf32>
    %c23_i32 = arith.constant 23 : i32
    %363 = vector.broadcast %c23_i32 : i32 to vector<1x128xi32>
    %364 = arith.cmpi eq, %246, %363 : vector<1x128xi32>
    %365 = vector.shape_cast %228 : vector<1x1xf32> to vector<1x1xf32>
    %366 = vector.broadcast %365 : vector<1x1xf32> to vector<1x128xf32>
    %367 = arith.select %364, %366, %362 : vector<1x128xi1>, vector<1x128xf32>
    %c24_i32 = arith.constant 24 : i32
    %368 = vector.broadcast %c24_i32 : i32 to vector<1x128xi32>
    %369 = arith.cmpi eq, %246, %368 : vector<1x128xi32>
    %370 = vector.shape_cast %85 : vector<1x1xf32> to vector<1x1xf32>
    %371 = vector.broadcast %370 : vector<1x1xf32> to vector<1x128xf32>
    %372 = arith.select %369, %371, %367 : vector<1x128xi1>, vector<1x128xf32>
    %c25_i32 = arith.constant 25 : i32
    %373 = vector.broadcast %c25_i32 : i32 to vector<1x128xi32>
    %374 = arith.cmpi eq, %246, %373 : vector<1x128xi32>
    %375 = vector.shape_cast %134 : vector<1x1xf32> to vector<1x1xf32>
    %376 = vector.broadcast %375 : vector<1x1xf32> to vector<1x128xf32>
    %377 = arith.select %374, %376, %372 : vector<1x128xi1>, vector<1x128xf32>
    %c26_i32 = arith.constant 26 : i32
    %378 = vector.broadcast %c26_i32 : i32 to vector<1x128xi32>
    %379 = arith.cmpi eq, %246, %378 : vector<1x128xi32>
    %380 = vector.shape_cast %183 : vector<1x1xf32> to vector<1x1xf32>
    %381 = vector.broadcast %380 : vector<1x1xf32> to vector<1x128xf32>
    %382 = arith.select %379, %381, %377 : vector<1x128xi1>, vector<1x128xf32>
    %c27_i32 = arith.constant 27 : i32
    %383 = vector.broadcast %c27_i32 : i32 to vector<1x128xi32>
    %384 = arith.cmpi eq, %246, %383 : vector<1x128xi32>
    %385 = vector.shape_cast %232 : vector<1x1xf32> to vector<1x1xf32>
    %386 = vector.broadcast %385 : vector<1x1xf32> to vector<1x128xf32>
    %387 = arith.select %384, %386, %382 : vector<1x128xi1>, vector<1x128xf32>
    %c28_i32 = arith.constant 28 : i32
    %388 = vector.broadcast %c28_i32 : i32 to vector<1x128xi32>
    %389 = arith.cmpi eq, %246, %388 : vector<1x128xi32>
    %390 = vector.shape_cast %89 : vector<1x1xf32> to vector<1x1xf32>
    %391 = vector.broadcast %390 : vector<1x1xf32> to vector<1x128xf32>
    %392 = arith.select %389, %391, %387 : vector<1x128xi1>, vector<1x128xf32>
    %c29_i32 = arith.constant 29 : i32
    %393 = vector.broadcast %c29_i32 : i32 to vector<1x128xi32>
    %394 = arith.cmpi eq, %246, %393 : vector<1x128xi32>
    %395 = vector.shape_cast %138 : vector<1x1xf32> to vector<1x1xf32>
    %396 = vector.broadcast %395 : vector<1x1xf32> to vector<1x128xf32>
    %397 = arith.select %394, %396, %392 : vector<1x128xi1>, vector<1x128xf32>
    %c30_i32 = arith.constant 30 : i32
    %398 = vector.broadcast %c30_i32 : i32 to vector<1x128xi32>
    %399 = arith.cmpi eq, %246, %398 : vector<1x128xi32>
    %400 = vector.shape_cast %187 : vector<1x1xf32> to vector<1x1xf32>
    %401 = vector.broadcast %400 : vector<1x1xf32> to vector<1x128xf32>
    %402 = arith.select %399, %401, %397 : vector<1x128xi1>, vector<1x128xf32>
    %c31_i32 = arith.constant 31 : i32
    %403 = vector.broadcast %c31_i32 : i32 to vector<1x128xi32>
    %404 = arith.cmpi eq, %246, %403 : vector<1x128xi32>
    %405 = vector.shape_cast %236 : vector<1x1xf32> to vector<1x1xf32>
    %406 = vector.broadcast %405 : vector<1x1xf32> to vector<1x128xf32>
    %407 = arith.select %404, %406, %402 : vector<1x128xi1>, vector<1x128xf32>
    %c32_i32 = arith.constant 32 : i32
    %408 = vector.broadcast %c32_i32 : i32 to vector<1x128xi32>
    %409 = arith.cmpi eq, %246, %408 : vector<1x128xi32>
    %410 = vector.shape_cast %98 : vector<1x1xf32> to vector<1x1xf32>
    %411 = vector.broadcast %410 : vector<1x1xf32> to vector<1x128xf32>
    %412 = arith.select %409, %411, %407 : vector<1x128xi1>, vector<1x128xf32>
    %c33_i32 = arith.constant 33 : i32
    %413 = vector.broadcast %c33_i32 : i32 to vector<1x128xi32>
    %414 = arith.cmpi eq, %246, %413 : vector<1x128xi32>
    %415 = vector.shape_cast %147 : vector<1x1xf32> to vector<1x1xf32>
    %416 = vector.broadcast %415 : vector<1x1xf32> to vector<1x128xf32>
    %417 = arith.select %414, %416, %412 : vector<1x128xi1>, vector<1x128xf32>
    %c34_i32 = arith.constant 34 : i32
    %418 = vector.broadcast %c34_i32 : i32 to vector<1x128xi32>
    %419 = arith.cmpi eq, %246, %418 : vector<1x128xi32>
    %420 = vector.shape_cast %196 : vector<1x1xf32> to vector<1x1xf32>
    %421 = vector.broadcast %420 : vector<1x1xf32> to vector<1x128xf32>
    %422 = arith.select %419, %421, %417 : vector<1x128xi1>, vector<1x128xf32>
    %c35_i32 = arith.constant 35 : i32
    %423 = vector.broadcast %c35_i32 : i32 to vector<1x128xi32>
    %424 = arith.cmpi eq, %246, %423 : vector<1x128xi32>
    %425 = vector.shape_cast %245 : vector<1x1xf32> to vector<1x1xf32>
    %426 = vector.broadcast %425 : vector<1x1xf32> to vector<1x128xf32>
    %427 = arith.select %424, %426, %422 : vector<1x128xi1>, vector<1x128xf32>
    %c36_i32 = arith.constant 36 : i32
    %428 = vector.broadcast %c36_i32 : i32 to vector<1x128xi32>
    %429 = arith.cmpi eq, %246, %428 : vector<1x128xi32>
    %430 = vector.shape_cast %40 : vector<1x1xf32> to vector<1x1xf32>
    %431 = vector.broadcast %430 : vector<1x1xf32> to vector<1x128xf32>
    %432 = arith.select %429, %431, %427 : vector<1x128xi1>, vector<1x128xf32>
    %c37_i32 = arith.constant 37 : i32
    %433 = vector.broadcast %c37_i32 : i32 to vector<1x128xi32>
    %434 = arith.cmpi eq, %246, %433 : vector<1x128xi32>
    %435 = vector.shape_cast %43 : vector<1x1xf32> to vector<1x1xf32>
    %436 = vector.broadcast %435 : vector<1x1xf32> to vector<1x128xf32>
    %437 = arith.select %434, %436, %432 : vector<1x128xi1>, vector<1x128xf32>
    %c38_i32 = arith.constant 38 : i32
    %438 = vector.broadcast %c38_i32 : i32 to vector<1x128xi32>
    %439 = arith.cmpi eq, %246, %438 : vector<1x128xi32>
    %440 = vector.shape_cast %46 : vector<1x1xf32> to vector<1x1xf32>
    %441 = vector.broadcast %440 : vector<1x1xf32> to vector<1x128xf32>
    %442 = arith.select %439, %441, %437 : vector<1x128xi1>, vector<1x128xf32>
    %c39_i32 = arith.constant 39 : i32
    %443 = vector.broadcast %c39_i32 : i32 to vector<1x128xi32>
    %444 = arith.cmpi eq, %246, %443 : vector<1x128xi32>
    %445 = vector.shape_cast %49 : vector<1x1xf32> to vector<1x1xf32>
    %446 = vector.broadcast %445 : vector<1x1xf32> to vector<1x128xf32>
    %447 = arith.select %444, %446, %442 : vector<1x128xi1>, vector<1x128xf32>
    %c0_154 = arith.constant 0 : index
    %c0_155 = arith.constant 0 : index
    %c0_156 = arith.constant 0 : index
    %448 = vector.load %arg6[%c0_154, %c0_155, %c0_156] : memref<1x1x128xf32, #tpu.memory_space<vmem>>, vector<1x1x128xf32>
    %449 = vector.shape_cast %447 : vector<1x128xf32> to vector<1x1x128xf32>
    %450 = arith.addf %448, %449 : vector<1x1x128xf32>
    %c0_157 = arith.constant 0 : index
    %c0_158 = arith.constant 0 : index
    %c0_159 = arith.constant 0 : index
    %451 = vector.load %arg6[%c0_157, %c0_158, %c0_159] : memref<1x1x128xf32, #tpu.memory_space<vmem>>, vector<1x1x128xf32>
    tpu.vector_store %arg6[%c0_157, %c0_158, %c0_159], %450 {strides = array<i32>} : memref<1x1x128xf32, #tpu.memory_space<vmem>>, vector<1x1x128xf32>,
    return
  }
  func.func @transform_0(%arg0: i32, %arg1: i32) -> (i32, i32, i32, i32) {
    %c0_i32 = arith.constant 0 : i32
    %c0_i32_0 = arith.constant 0 : i32
    %c0_i32_1 = arith.constant 0 : i32
    return %arg0, %c0_i32, %arg1, %c0_i32_0 : i32, i32, i32, i32
  }
  func.func @transform_1(%arg0: i32, %arg1: i32) -> (i32, i32, i32, i32) {
    %c0_i32 = arith.constant 0 : i32
    %c0_i32_0 = arith.constant 0 : i32
    %c0_i32_1 = arith.constant 0 : i32
    return %arg0, %c0_i32, %arg1, %c0_i32_0 : i32, i32, i32, i32
  }
  func.func @transform_2(%arg0: i32, %arg1: i32) -> (i32, i32, i32, i32) {
    %c0_i32 = arith.constant 0 : i32
    %c0_i32_0 = arith.constant 0 : i32
    %c0_i32_1 = arith.constant 0 : i32
    return %arg0, %c0_i32, %arg1, %c0_i32_0 : i32, i32, i32, i32
  }
  func.func @transform_3(%arg0: i32, %arg1: i32) -> (i32, i32, i32, i32) {
    %c0_i32 = arith.constant 0 : i32
    %c0_i32_0 = arith.constant 0 : i32
    %c0_i32_1 = arith.constant 0 : i32
    return %arg0, %c0_i32, %arg1, %c0_i32_0 : i32, i32, i32, i32
  }
  func.func @transform_4(%arg0: i32, %arg1: i32) -> (i32, i32, i32) {
    %c0_i32 = arith.constant 0 : i32
    %c0_i32_0 = arith.constant 0 : i32
    %c0_i32_1 = arith.constant 0 : i32
    return %arg0, %c0_i32, %c0_i32_0 : i32, i32, i32
  }
}

</mosaic_0001>

<bundles_post_ra>
// kernel: tpu_custom_call.1
= control target key start
LH: loop header
LB: loop body
LE: loop exit
PB: predicated region body
PF: predicated region fallthrough
CT: control target
= control target key end

     0   :  { %s2099_s0 = inlined_call_operand.hbm [shape: f32[2,4,2,128], index: 0, kind: input, shape index: {}]   ;;  %s2100_s1 = inlined_call_operand.hbm [shape: f32[2,3,2,128], index: 1, kind: input, shape index: {}]   ;;  %s2101_s2 = inlined_call_operand.hbm [shape: f32[2,2,2,128], index: 2, kind: input, shape index: {}]   ;;  %s2102_s3 = inlined_call_operand.hbm [shape: s32[2,1,2,128], index: 3, kind: input, shape index: {}]   ;;  %s2103_s4 = inlined_call_operand.hbm [shape: f32[2,1,128], index: 4, kind: output, shape index: {}]  }
   0x1   :  { %2112 = sst [smem:[#allocation17_spill]] %s2099_s0 }
   0x2   :  { %2113 = sst [smem:[#allocation18_spill]] %s2100_s1 }
   0x3   :  { %9 = vsyncpa [#allocation3], 0 }
   0x4   :  { %11 = vsyncpa [#allocation3 + $0x1], 0 }
   0x5   :  { %12 = vsyncpa [#allocation6], 0 }
   0x6   :  { %14 = vsyncpa [#allocation6 + $0x1], 0 }
   0x7   :  { %15 = vsyncpa [#allocation9], 0 }
   0x8   :  { %17 = vsyncpa [#allocation9 + $0x1], 0 }
   0x9   :  { %18 = vsyncpa [#allocation4], 0 }
   0xa   :  { %20 = vsyncpa [#allocation4 + $0x1], 0  ;;  %s1457_s15 = smov 0   ;;  %s1459_s16 = smov 0  }
   0xb   :  { %s1461_s17 = smov 0   ;;  %s1463_s18 = smov 0  }
   0xc   :  { %s1465_s19 = smov 0   ;;  %s1467_s20 = smov 0  }
   0xd LB: > { %s1488_s21 = sadd.s32 4294967295, %s1421_s20   ;;  %s1092_s22 = sadd.s32 4294967294, %s1421_s20   ;;  %s1421_s20 = sphi %s1467_s20, %s26_s20   ;;  %s1417_s19 = sphi %s1465_s19, %s2141_s19   ;;  %s1413_s18 = sphi %s1463_s18, %s2140_s18   ;;  %s1409_s17 = sphi %s1461_s17, %s2139_s17   ;;  %s1405_s16 = sphi %s1459_s16, %s2138_s16   ;;  %s1401_s15 = sphi %s1457_s15, %s2137_s15  }
   0xe   : > { %s38_s23 = sadd.s32 1, %s1417_s19  ;;  %s47_s24 = sadd.s32 1, %s1409_s17 }
   0xf   : > { %p40_p0 = scmp.ge.s32.totalorder %s38_s23, 2  ;;  %p54_p1 = scmp.ne.s32.totalorder %s1409_s17, %s1405_s16 }
  0x10   : > { %p55_p2 = scmp.eq.s32.totalorder %s1421_s20, 0  ;;  %p60_p3 = scmp.ne.s32.totalorder %s1405_s16, %s1401_s15 }
  0x11   : > { %s2143_s23 = smov (%p40_p0, %s38_s23), 0  ;;  %p61_p5 = scmp.eq.s32.totalorder %s1488_s21, 0 }
  0x12   : > { %2114 = sst [smem:[#allocation15_spill]] %s2143_s23  ;;  %p1500_p4 = por %p55_p2, %p54_p1 }
  0x13   : > { %s42_s26 = ssub.s32 %s1417_s19, %s2143_s23  ;;  %p168_p6 = scmp.eq.s32.totalorder %s1488_s21, 1 }
  0x14   : > { %p45_p7 = scmp.eq.s32.totalorder %s42_s26, 0  ;;  %p1508_p8 = por %p61_p5, %p60_p3 }
  0x15   : > { %p1512_p9 = por %p168_p6, %p54_p1  ;;  %p174_p10 = scmp.eq.s32.totalorder %s1092_s22, 1 }
  0x16   : > { %s2116_s27 = scalar_select %p1508_p8, 1, 0 }
  0x17   : > { %s2117_s28 = scalar_select %p1512_p9, 1, 0 }
  0x18   : > { %s1517_s29 = scalar_select %p45_p7, %s1409_s17, %s47_s24  }
  0x19   : > { %p1519_p11 = por %p174_p10, %p60_p3  ;;  %p1149_p13 = scmp.lt.s32.totalorder %s1421_s20, 2 }
  0x1a   : > { %2118 = sst [smem:[#allocation16_spill]] %s1517_s29  ;;  %s1526_s5 = sand.u32 1, %s1409_s17  }
  0x1b   : > { %s2119_s30 = scalar_select %p1519_p11, 1, 0 }
  0x1c   : > { %p1530_p0 = pnand %p1149_p13, %p1500_p4  ;;  %s216_s7 = sand.u32 1, %s1421_s20  }
  0x1d   : > { %s1119_s8 = smul.u32 6, %s1526_s5  ;;  %s2121_s1 = sld [smem:[#allocation18_spill]] }
  0x1e   : > { %s2120_s6 = scalar_select %p1530_p0, 1, 0 }
  0x1f   : > { %s1120_s9 = smul.u32 96, %s1417_s19  ;;  %s220_s13 = scalar_lea.vmem [#allocation5], %s1119_s8 }
  0x20   : > { %s228_s14 = sshll.u32 %s220_s13, 4  ;;  %s1546_s22 = scalar_lea.sflag [#allocation6], %s216_s7  ;;  %s1543_s14 = int_to_ptr.vmem [resolvable:$true] %s228_s14 }
  0x21   : > { %p1552_p4 = pneg %p1530_p0 }
  0x23   : > { %s1541_s12 = scalar_lea.hbm %s2121_s1, %s1120_s9  ;;  %s1216_s8 = scalar_lea.hbm %s2121_s1, 192 }
  0x24   : > { %s1211_s24 = scalar_lea.hbm %s1541_s12, 96  ;;  %p1217_p7 = scmp.lt.u32.totalorder %s1541_s12, %s2121_s1 }
  0x25   : > { %p1212_p3 = scmp.ne.s32.totalorder %s1541_s12, %s1211_s24  ;;  %p1218_p10 = scmp.lt.u32.totalorder %s1216_s8, %s1211_s24 }
  0x26   : > { %p1220_p12 = scmp.lt.u32.totalorder %s1211_s24, %s1541_s12 }
  0x27   : > { %p1214_p5 = pnand %p1552_p4, %p1212_p3  ;;  %p1219_p13 = por %p1218_p10, %p1217_p7 }
  0x29   : > { %p1215_p6 = pneg %p1214_p5  ;;  %p1221_p1 = por %p1220_p12, %p1219_p13 }
  0x2b   : > { %p1222_p2 = pnand %p1221_p1, %p1215_p6 }
  0x2d   : > { %1225 = shalt.err (!%p1222_p2)
}
  0x2e   : > { %s1226_s7 = scalar_lea.vmem %s1543_s14, 96  ;;  %s1423_s13 = smov [#allocation5]  }
  0x2f   : > { %p1227_p3 = scmp.ne.s32.totalorder %s1543_s14, %s1226_s7  ;;  %s1231_s26 = sshll.u32 %s1423_s13, 4  ;;  %s1232_s26 = int_to_ptr.vmem [resolvable:$false] %s1231_s26 }
  0x30   : > { %s1233_s9 = scalar_lea.vmem %s1232_s26, 192  ;;  %p1234_p9 = scmp.lt.s32.totalorder %s1543_s14, %s1232_s26 }
  0x31   : > { %p1229_p5 = pnand %p1227_p3, %p1552_p4  ;;  %p1235_p8 = scmp.lt.s32.totalorder %s1233_s9, %s1226_s7 }
  0x33   : > { %p1230_p11 = pneg %p1229_p5  ;;  %p1236_p7 = por %p1235_p8, %p1234_p9 }
  0x35   : > { %p1237_p10 = pnand %p1236_p7, %p1230_p11 }
  0x37   : > { %1240 = shalt.err (!%p1237_p10)
}
  0x38   : > { %s2107_s24 = smov 32   ;;  %s2109_s8 = smov 2  }
  0x39   : > { %1138 = dma.hbm_to_vmem [thread:$0]  (!%p1530_p0), %s1541_s12, 96, %s1543_s14, %s1546_s22, %s2107_s24, %s2107_s24, %s2109_s8  }
  0x3a   : > { %p2123_p8 = scmp.lt.s32.totalorder %s1421_s20, 3  ;;  %p2124_p9 = scmp.ge.s32.totalorder %s1421_s20, 1 }
  0x3b   : > { %s1095_s11 = sshll.u32 %s1526_s5, 3  ;;  %s1117_s7 = sshll.u32 %s1417_s19, 7 }
  0x3c   : > { %p1583_p11 = pnand %p2124_p9, %p2123_p8  ;;  %s2126_s0 = sld [smem:[#allocation17_spill]] }
  0x3d   : > { %s198_s1 = scalar_lea.vmem [#allocation2], %s1095_s11  ;;  %s1099_s12 = sshll.u32 %s1526_s5, 2 }
  0x3e   : > { %s2125_s10 = scalar_select %p1583_p11, 1, 0 }
  0x3f   : > { %s206_s23 = sshll.u32 %s198_s1, 4  ;;  %s195_s14 = scalar_lea.sflag [#allocation3], %s1526_s5  ;;  %s1595_s23 = int_to_ptr.vmem [resolvable:$true] %s206_s23 }
  0x42   : > { %s1592_s9 = scalar_lea.hbm %s2126_s0, %s1117_s7  ;;  %s1246_s7 = scalar_lea.hbm %s2126_s0, 256 }
  0x43   : > { %s1241_s24 = scalar_lea.hbm %s1592_s9, 128  ;;  %p1247_p6 = scmp.lt.u32.totalorder %s1592_s9, %s2126_s0 }
  0x44   : > { %p1242_p12 = scmp.ne.s32.totalorder %s1592_s9, %s1241_s24  ;;  %p1248_p13 = scmp.lt.u32.totalorder %s1246_s7, %s1241_s24 }
  0x45   : > { %p1250_p5 = scmp.lt.u32.totalorder %s1241_s24, %s1592_s9 }
  0x46   : > { %p1244_p1 = pnand %p1242_p12, %p1552_p4  ;;  %p1249_p3 = por %p1248_p13, %p1247_p6 }
  0x48   : > { %p1245_p2 = pneg %p1244_p1  ;;  %p1251_p7 = por %p1250_p5, %p1249_p3 }
  0x4a   : > { %p1252_p10 = pnand %p1251_p7, %p1245_p2 }
  0x4c   : > { %1255 = shalt.err (!%p1252_p10)
}
  0x4d   : > { %s1256_s1 = scalar_lea.vmem %s1595_s23, 128  ;;  %s1426_s29 = smov [#allocation2]  }
  0x4e   : > { %p1257_p8 = scmp.ne.s32.totalorder %s1595_s23, %s1256_s1  ;;  %s1261_s8 = sshll.u32 %s1426_s29, 4  ;;  %s1262_s8 = int_to_ptr.vmem [resolvable:$false] %s1261_s8 }
  0x4f   : > { %s1263_s11 = scalar_lea.vmem %s1262_s8, 256  ;;  %p1264_p1 = scmp.lt.s32.totalorder %s1595_s23, %s1262_s8 }
  0x50   : > { %p1259_p9 = pnand %p1257_p8, %p1552_p4  ;;  %p1265_p11 = scmp.lt.s32.totalorder %s1263_s11, %s1256_s1 }
  0x52   : > { %p1260_p12 = pneg %p1259_p9  ;;  %p1266_p6 = por %p1265_p11, %p1264_p1 }
  0x54   : > { %p1267_p13 = pnand %p1266_p6, %p1260_p12 }
  0x56   : > { %1270 = shalt.err (!%p1267_p13)
}
  0x57   : > { %s2127_s24 = smov 2   ;;  %s2128_s7 = smov 32  }
  0x58   : > { %1135 = dma.hbm_to_vmem [thread:$0]  (!%p1530_p0), %s1592_s9, 128, %s1595_s23, %s195_s14, %s2128_s7, %s2128_s7, %s2127_s24  }
  0x59   : > { %s1118_s13 = sshll.u32 %s1417_s19, 6  ;;  %s242_s26 = scalar_lea.vmem [#allocation7], %s1099_s12 }
  0x5a   : > { %s250_s1 = sshll.u32 %s242_s26, 4  ;;  %s1630_s11 = scalar_lea.hbm %s2101_s2, %s1118_s13  ;;  %s1632_s1 = int_to_ptr.vmem [resolvable:$true] %s250_s1 }
  0x5b   : > { %s1271_s0 = scalar_lea.hbm %s1630_s11, 64  ;;  %s1276_s12 = scalar_lea.hbm %s2101_s2, 128 }
  0x5c   : > { %p1272_p11 = scmp.ne.s32.totalorder %s1630_s11, %s1271_s0  ;;  %p1277_p5 = scmp.lt.u32.totalorder %s1630_s11, %s2101_s2 }
  0x5d   : > { %p1278_p7 = scmp.lt.u32.totalorder %s1276_s12, %s1271_s0  ;;  %p1280_p8 = scmp.lt.u32.totalorder %s1271_s0, %s1630_s11 }
  0x5e   : > { %p1274_p2 = pnand %p1272_p11, %p1552_p4 }
  0x5f   : > { %p1279_p10 = por %p1278_p7, %p1277_p5 }
  0x60   : > { %p1275_p3 = pneg %p1274_p2 }
  0x61   : > { %p1281_p9 = por %p1280_p8, %p1279_p10 }
  0x63   : > { %p1282_p12 = pnand %p1281_p9, %p1275_p3 }
  0x65   : > { %1285 = shalt.err (!%p1282_p12)
}
  0x66   : > { %s1286_s13 = scalar_lea.vmem %s1632_s1, 64  ;;  %s1427_s29 = smov [#allocation7]  }
  0x67   : > { %p1287_p1 = scmp.ne.s32.totalorder %s1632_s1, %s1286_s13  ;;  %s1291_s8 = sshll.u32 %s1427_s29, 4  ;;  %s1292_s8 = int_to_ptr.vmem [resolvable:$false] %s1291_s8 }
  0x68   : > { %s1293_s23 = scalar_lea.vmem %s1292_s8, 128  ;;  %p1294_p11 = scmp.lt.s32.totalorder %s1632_s1, %s1292_s8 }
  0x69   : > { %p1289_p6 = pnand %p1287_p1, %p1552_p4  ;;  %p1295_p2 = scmp.lt.s32.totalorder %s1293_s23, %s1286_s13 }
  0x6b   : > { %p1290_p13 = pneg %p1289_p6  ;;  %p1296_p5 = por %p1295_p2, %p1294_p11 }
  0x6d   : > { %p1297_p7 = pnand %p1296_p5, %p1290_p13 }
  0x6f   : > { %1300 = shalt.err (!%p1297_p7)
}
  0x70   : > { %1141 = dma.hbm_to_vmem [thread:$0]  (!%p1530_p0), %s1630_s11, 64, %s1632_s1, %s1546_s22, %s2128_s7, %s2128_s7, %s2127_s24  }
  0x71   : > { %s1102_s0 = sshll.u32 %s1526_s5, 1  ;;  %s1103_s9 = sshll.u32 %s1417_s19, 5 }
  0x72   : > { %s1664_s26 = scalar_lea.hbm %s2102_s3, %s1103_s9  ;;  %s264_s13 = scalar_lea.vmem [#allocation8], %s1102_s0 }
  0x73   : > { %s272_s29 = sshll.u32 %s264_s13, 4  ;;  %s261_s8 = scalar_lea.sflag [#allocation9], %s1526_s5  ;;  %s273_s29 = int_to_ptr.vmem [resolvable:$true] %s272_s29 }
  0x74   : > { %s1301_s23 = scalar_lea.hbm %s1664_s26, 32  ;;  %s1306_s7 = scalar_lea.hbm %s2102_s3, 64 }
  0x75   : > { %p1302_p3 = scmp.ne.s32.totalorder %s1664_s26, %s1301_s23  ;;  %p1307_p9 = scmp.lt.u32.totalorder %s1664_s26, %s2102_s3 }
  0x76   : > { %p1308_p12 = scmp.lt.u32.totalorder %s1306_s7, %s1301_s23  ;;  %p1310_p6 = scmp.lt.u32.totalorder %s1301_s23, %s1664_s26 }
  0x77   : > { %p1304_p10 = pnand %p1302_p3, %p1552_p4 }
  0x78   : > { %p1309_p1 = por %p1308_p12, %p1307_p9 }
  0x79   : > { %p1305_p8 = pneg %p1304_p10 }
  0x7a   : > { %p1311_p13 = por %p1310_p6, %p1309_p1 }
  0x7c   : > { %p1312_p11 = pnand %p1311_p13, %p1305_p8 }
  0x7e   : > { %1315 = shalt.err (!%p1312_p11)
}
  0x7f   : > { %s1316_s5 = scalar_lea.vmem %s273_s29, 32  ;;  %s1428_s0 = smov [#allocation8]  }
  0x80   : > { %p1317_p2 = scmp.ne.s32.totalorder %s273_s29, %s1316_s5  ;;  %s1321_s9 = sshll.u32 %s1428_s0, 4  ;;  %s1322_s9 = int_to_ptr.vmem [resolvable:$false] %s1321_s9 }
  0x81   : > { %s1323_s12 = scalar_lea.vmem %s1322_s9, 64  ;;  %p1324_p3 = scmp.lt.s32.totalorder %s273_s29, %s1322_s9 }
  0x82   : > { %p1319_p5 = pnand %p1317_p2, %p1552_p4  ;;  %p1325_p10 = scmp.lt.s32.totalorder %s1323_s12, %s1316_s5 }
  0x84   : > { %p1320_p7 = pneg %p1319_p5  ;;  %p1326_p0 = por %p1325_p10, %p1324_p3 }
  0x86   : > { %p1327_p9 = pnand %p1326_p0, %p1320_p7 }
  0x88   : > { %1330 = shalt.err (!%p1327_p9)
}
  0x89   : > { %p2129_p12 = scmp.ne.s32.totalorder %s2120_s6, 0  ;;  %p2130_p8 = scmp.ne.s32.totalorder %s2125_s10, 0 }
  0x8a   : > { %s1687_s25 = sand.u32 (!%p2130_p8), 1, %s1405_s16   ;;  %p2131_p4 = scmp.ne.s32.totalorder (!%p2130_p8), %s2116_s27, 0 }
  0x8b   : > { %1144 = dma.hbm_to_vmem [thread:$0]  (!%p2129_p12), %s1664_s26, 32, %s273_s29, %s261_s8  }
  0x8c   : > { %281 = sbr.rel (%p2130_p8) target bundleno = 416 (0x1a0), region = 36  ;;  %s1105_s14 = sshll.u32 (!%p2130_p8), %s1687_s25, 3 }
  0x8d   : > { %s284_s13 = scalar_lea.sflag (!%p2130_p8), [#allocation3], %s1687_s25  ;;  %s287_s23 = scalar_lea.vmem (!%p2130_p8), [#allocation2], %s1105_s14 }
  0x93   : > { %1384 = dma.done.wait (%p2131_p4), %s284_s13, 128  }
  0x94   : > { %1386 = vsyncadd (%p2131_p4), %s284_s13, 4294967168  ;;  %s292_s6 = sand.u32 1, %s1488_s21   ;;  %s1121_s10 = smul.u32 6, %s1687_s25 }
  0x95   : > { %s293_s26 = scalar_lea.sflag [#allocation6], %s292_s6 }
  0x96   : > { %s296_s29 = scalar_lea.vmem [#allocation5], %s1121_s10 }
  0x97   : > { %1388 = dma.done.wait (%p2131_p4), %s293_s26, 160  }
  0x98   : > { %1390 = vsyncadd (%p2131_p4), %s293_s26, 4294967136  ;;  %s1106_s8 = sshll.u32 %s1687_s25, 2  ;;  %s1107_s22 = sshll.u32 %s1687_s25, 1 }
  0x99   : > { %s1703_s24 = scalar_lea.vmem [#allocation7], %s1106_s8  ;;  %s311_s7 = scalar_lea.sflag [#allocation9], %s1687_s25 }
  0x9a   : > { %s1706_s1 = scalar_lea.vmem [#allocation8], %s1107_s22 }
  0x9b   : > { %1392 = dma.done.wait (%p2131_p4), %s311_s7, 32  }
  0x9c   : > { %1394 = vsyncadd (%p2131_p4), %s311_s7, 4294967264  ;;  %vm382_vm0 = vcmask 1041408   ;;  %v1712_v0 = vld [vmem:[%s287_s23 + $0x2] sm:$0x3]  ;;  %v1714_v1 = vld [vmem:[%s287_s23] sm:$0x3] }
  0x9d   : > { %v1716_v2 = vld [vmem:[%s287_s23 + $0x6] sm:$0x3]  ;;  %v1720_v3 = vmul.f32 %v1712_v0, %v1712_v0  ;;  %v1724_v4 = vmul.f32 %v1714_v1, %v1714_v1  ;;  %v1730_v6 = vld [vmem:[%s287_s23 + $0x4] sm:$0x3]  ;;  %v358_v7 = vld [vmem:[%s296_s29] sm:$0x3] }
  0x9e   : > { %v1728_v5 = vmul.f32 %v1716_v2, %v1716_v2  ;;  %v1108_v8 = vld [vmem:[%s296_s29 + $0x2] sm:$0x3]  ;;  %v1734_v9 = vmul.f32 %v1730_v6, %v1730_v6  ;;  %v1109_v10 = vld [vmem:[%s296_s29 + $0x4] sm:$0x3]  ;;  %v1429_v17 = vmov 3   ;;  %v1430_v29 = vmov 0.0  }
  0x9f   : > { %v363_v11 = vadd.f32 %v1108_v8, %v358_v7  ;;  %vm366_vm1 = vcmp.ge.f32.partialorder %v358_v7, %v1108_v8  ;;  %v544_v12 = vsel %vm382_vm0, %v1720_v3, 0.0  ;;  %v438_v13 = vsel %vm382_vm0, %v1724_v4, 0.0  ;;  %v373_v32 = vld [vmem:[%s1706_s1] sm:$0x3]  ;;  %v1110_v41 = vld [vmem:[%s1703_s24 + $0x2] sm:$0x3] }
  0xa0   : > { %vm367_vm2 = vcmp.ge.f32.partialorder %v358_v7, %v1109_v10  ;;  %545 = vadd.xlane.f32.xlu1 %v544_v12  ;;  %439 = vadd.xlane.f32.xlu0 %v438_v13  ;;  %vm369_vm4 = vcmp.ge.f32.partialorder %v1108_v8, %v1109_v10  ;;  %v756_v15 = vsel %vm382_vm0, %v1728_v5, 0.0  ;;  %v650_v16 = vsel %vm382_vm0, %v1734_v9, 0.0  ;;  %v375_v62 = vld [vmem:[%s1703_s24] sm:$0x3]  ;;  %s1885_s21 = scalar_lea.vmem [#allocation10], %s1687_s25  ;;  %s1114_s27 = sshll.u32 %s1413_s18, 4 }
  0xa1   : > { %v364_v14 = vadd.f32 %v1109_v10, %v363_v11  ;;  %vm368_vm3 = vmand %vm366_vm1, %vm367_vm2  ;;  %v370_v18 = vsel %vm369_vm4, 2, %v1429_v17  ;;  %vm374_vm10 = vcmp.ne.s32.totalorder %v373_v32, 0  ;;  %v1811_v51 = vmul.f32 %v1110_v41, %v1110_v41  ;;  %357 = vst [vmem:[%s1885_s21] sm:$0x1] %v1430_v29  ;;  %s944_s11 = sshll.u32 %s1885_s21, 4  ;;  %s2049_s9 = scalar_lea.hbm %s2103_s4, %s1114_s27  ;;  %s2051_s11 = int_to_ptr.vmem [resolvable:$true] %s944_s11 }
  0xa2   : > { %v371_v19 = vsel %vm368_vm3, 1, %v370_v18  ;;  %v1803_v46 = vsel %vm374_vm10, %v1110_v41, 0.0  ;;  %v619_v57 = vsub.f32 1.0, %v1712_v0  ;;  %v513_v61 = vsub.f32 1.0, %v1714_v1  ;;  %s932_s12 = scalar_lea.sflag [#allocation4], %s1687_s25  ;;  %s1331_s14 = scalar_lea.vmem %s2051_s11, 16 }
  0xa3   : > { %vm365_vm5 = vcmp.eq.f32.partialorder %v364_v14, 0.0  ;;  %v586_v56 = vmul.f32 %v1720_v3, %v1811_v51  ;;  %v480_v60 = vmul.f32 %v1724_v4, %v1811_v51  ;;  %v798_v7 = vmul.f32 %v1728_v5, %v1811_v51  ;;  %p1332_p0 = scmp.ne.s32.totalorder %s2051_s11, %s1331_s14  ;;  %p2132_p1 = scmp.ne.s32.totalorder %s2117_s28, 0 }
  0xa4   : > { %v1744_v20 = vsel %vm365_vm5, 0, %v371_v19  ;;  %757 = vadd.xlane.f32.xlu1 %v756_v15  ;;  %651 = vadd.xlane.f32.xlu0 %v650_v16  ;;  %v831_v10 = vsub.f32 1.0, %v1716_v2  ;;  %v692_v12 = vmul.f32 %v1734_v9, %v1811_v51  ;;  %v725_v14 = vsub.f32 1.0, %v1730_v6  ;;  %s1431_s18 = smov [#allocation10]  }
  0xa5   : > { %vm634_vm6 = vcmp.eq.s32.totalorder %v1744_v20, 2  ;;  %vm423_vm7 = vcmp.eq.s32.totalorder %v1744_v20, 0  ;;  %vm740_vm8 = vcmp.eq.s32.totalorder %v1744_v20, 3  ;;  %vm528_vm9 = vcmp.eq.s32.totalorder %v1744_v20, 1  ;;  %p1333_p6 = pnand %p1332_p0, %p2132_p1  ;;  %s1335_s13 = sshll.u32 %s1431_s18, 4  ;;  %s1336_s13 = int_to_ptr.vmem [resolvable:$false] %s1335_s13 }
  0xa6   : > { %v1753_v21 = vsel %vm634_vm6, %v1730_v6, 0.0  ;;  %v1758_v22 = vsel %vm423_vm7, %v1714_v1, 0.0  ;;  %v1767_v25 = vsel %vm740_vm8, %v1716_v2, 0.0  ;;  %v1772_v26 = vsel %vm528_vm9, %v1712_v0, 0.0  ;;  %s1337_s23 = scalar_lea.vmem %s1336_s13, 32  ;;  %p1338_p11 = scmp.lt.s32.totalorder %s2051_s11, %s1336_s13 }
  0xa7   : > { %v640_v23 = vsel %vm382_vm0, %v1753_v21, 0.0  ;;  %v428_v24 = vsel %vm382_vm0, %v1758_v22, 0.0  ;;  %v746_v27 = vsel %vm382_vm0, %v1767_v25, 0.0  ;;  %v534_v28 = vsel %vm382_vm0, %v1772_v26, 0.0  ;;  %p1334_p13 = pneg %p1333_p6  ;;  %p1339_p2 = scmp.lt.s32.totalorder %s1337_s23, %s1331_s14 }
  0xa8   : > { %641 = vadd.xlane.f32.xlu1 %v640_v23  ;;  %429 = vadd.xlane.f32.xlu0 %v428_v24  ;;  %v533_v30 = vsel %vm528_vm9, 1.0, %v1430_v29  ;;  %v427_v31 = vsel %vm423_vm7, 1.0, %v1430_v29  ;;  %v745_v35 = vsel %vm740_vm8, 1.0, %v1430_v29  ;;  %v639_v36 = vsel %vm634_vm6, 1.0, %v1430_v29 }
  0xa9   : > { %v554_v33 = vsel %vm382_vm0, %v533_v30, 0.0  ;;  %v448_v34 = vsel %vm382_vm0, %v427_v31, 0.0  ;;  %v766_v37 = vsel %vm382_vm0, %v745_v35, 0.0  ;;  %v660_v38 = vsel %vm382_vm0, %v639_v36, 0.0  ;;  %p1340_p5 = por %p1339_p2, %p1338_p11 }
  0xaa   : > { %v564_v39 = vsel %vm374_vm10, %v533_v30, 0.0  ;;  %v458_v40 = vsel %vm374_vm10, %v427_v31, 0.0  ;;  %v776_v44 = vsel %vm374_vm10, %v745_v35, 0.0  ;;  %v670_v45 = vsel %vm374_vm10, %v639_v36, 0.0 }
  0xab   : > { %v565_v42 = vsel %vm382_vm0, %v564_v39, 0.0  ;;  %v459_v43 = vsel %vm382_vm0, %v458_v40, 0.0  ;;  %v777_v47 = vsel %vm382_vm0, %v776_v44, 0.0  ;;  %v671_v48 = vsel %vm382_vm0, %v670_v45, 0.0  ;;  %p1341_p7 = pnand %p1340_p5, %p1334_p13 }
  0xac   : > { %747 = vadd.xlane.f32.xlu1 %v746_v27  ;;  %535 = vadd.xlane.f32.xlu0 %v534_v28  ;;  %v575_v49 = vmul.f32 %v1772_v26, %v1803_v46  ;;  %v469_v50 = vmul.f32 %v1758_v22, %v1803_v46  ;;  %v787_v54 = vmul.f32 %v1767_v25, %v1803_v46  ;;  %v587_v63 = vsel %vm382_vm0, %v586_v56, 0.0 }
  0xad   : > { %v681_v55 = vmul.f32 %v1753_v21, %v1803_v46  ;;  %v620_v8 = vsel %vm528_vm9, %v1712_v0, %v619_v57  ;;  %v481_v11 = vsel %vm382_vm0, %v480_v60, 0.0  ;;  %v514_v13 = vsel %vm423_vm7, %v1714_v1, %v513_v61 }
  0xae   : > { %v576_v52 = vsel %vm382_vm0, %v575_v49, 0.0  ;;  %v470_v53 = vsel %vm382_vm0, %v469_v50, 0.0  ;;  %v788_v58 = vsel %vm382_vm0, %v787_v54, 0.0  ;;  %v1843_v15 = vsel %vm374_vm10, 0.0, %v375_v62 }
  0xaf   : > { %v682_v59 = vsel %vm382_vm0, %v681_v55, 0.0  ;;  %1203 = vlog2.f32 %v620_v8  ;;  %v799_v0 = vsel %vm382_vm0, %v798_v7, 0.0  ;;  %v832_v16 = vsel %vm740_vm8, %v1716_v2, %v831_v10 }
  0xb0   : > { %555 = vadd.xlane.f32.xlu1 %v554_v33  ;;  %449 = vadd.xlane.f32.xlu0 %v448_v34  ;;  %1205 = vlog2.f32 %v514_v13  ;;  %v693_v17 = vsel %vm382_vm0, %v692_v12, 0.0  ;;  %v597_v1 = vmul.f32 %v1772_v26, %v1843_v15  ;;  %v491_v18 = vmul.f32 %v1758_v22, %v1843_v15 }
  0xb1   : > { %v726_v19 = vsel %vm634_vm6, %v1730_v6, %v725_v14  ;;  %1207 = vlog2.f32 %v832_v16  ;;  %v379_v23 = vmul.f32 %v375_v62, %v375_v62  ;;  %v809_v27 = vmul.f32 %v1767_v25, %v1843_v15 }
  0xb2   : > { %1209 = vlog2.f32 %v726_v19  ;;  %v598_v24 = vsel %vm382_vm0, %v597_v1, 0.0  ;;  %v492_v2 = vsel %vm382_vm0, %v491_v18, 0.0  ;;  %v703_v26 = vmul.f32 %v1753_v21, %v1843_v15 }
  0xb3   : > { %v810_v6 = vsel %vm382_vm0, %v809_v27, 0.0  ;;  %v608_v28 = vmul.f32 %v1720_v3, %v379_v23  ;;  %v502_v30 = vmul.f32 %v1724_v4, %v379_v23  ;;  %v820_v32 = vmul.f32 %v1728_v5, %v379_v23 }
  0xb4   : > { %767 = vadd.xlane.f32.xlu1 %v766_v37  ;;  %661 = vadd.xlane.f32.xlu0 %v660_v38  ;;  %v704_v20 = vsel %vm382_vm0, %v703_v26, 0.0  ;;  %v714_v25 = vmul.f32 %v1734_v9, %v379_v23  ;;  %v413_v49 = vsel %vm382_vm0, %v379_v23, 0.0  ;;  %v403_v50 = vsel %vm382_vm0, %v1843_v15, 0.0 }
  0xb5   : > { %v609_v21 = vsel %vm382_vm0, %v608_v28, 0.0  ;;  %v503_v34 = vsel %vm382_vm0, %v502_v30, 0.0  ;;  %v821_v3 = vsel %vm382_vm0, %v820_v32, 0.0  ;;  %v846_v29 = vlaneseq }
  0xb6   : > { %v715_v4 = vsel %vm382_vm0, %v714_v25, 0.0 }
  0xb7   : > { %v1895_v1 = vand.u32 127, %v846_v29 }
  0xb8   : > { %566 = vadd.xlane.f32.xlu1 %v565_v42  ;;  %460 = vadd.xlane.f32.xlu0 %v459_v43 }
  0xb9   : > { %v1204_v22 = vpop.eup %1203  ;;  %vm848_vm11 = vcmp.eq.s32.totalorder %v1895_v1, 0  ;;  %vm850_vm12 = vcmp.eq.s32.totalorder %v1895_v1, 1  ;;  %vm852_vm13 = vcmp.eq.s32.totalorder %v1895_v1, 2  ;;  %vm854_vm14 = vcmp.eq.s32.totalorder %v1895_v1, 3 }
  0xba   : > { %v1206_v31 = vpop.eup %1205  ;;  %v622_v35 = vmul.f32 0.6931472, %v1204_v22  ;;  %vm856_vm15 = vcmp.eq.s32.totalorder %v1895_v1, 4  ;;  %vm858_vm1 = vcmp.eq.s32.totalorder %v1895_v1, 5  ;;  %vm860_vm2 = vcmp.eq.s32.totalorder %v1895_v1, 6 }
  0xbb   : > { %v1208_v33 = vpop.eup %1207  ;;  %v516_v36 = vmul.f32 0.6931472, %v1206_v31  ;;  %vm862_vm3 = vcmp.eq.s32.totalorder %v1895_v1, 7  ;;  %vm864_vm4 = vcmp.eq.s32.totalorder %v1895_v1, 8  ;;  %vm866_vm5 = vcmp.eq.s32.totalorder %v1895_v1, 9 }
  0xbc   : > { %778 = vadd.xlane.f32.xlu1 %v777_v47  ;;  %672 = vadd.xlane.f32.xlu0 %v671_v48  ;;  %v1210_v37 = vpop.eup %1209  ;;  %v623_v38 = vmax.f32 %v622_v35, -100.0  ;;  %v834_v40 = vmul.f32 0.6931472, %v1208_v33  ;;  %v393_v47 = vsel %vm382_vm0, %v1811_v51, 0.0  ;;  %v383_v48 = vsel %vm382_vm0, %v1803_v46, 0.0 }
  0xbd   : > { %v517_v39 = vmax.f32 %v516_v36, -100.0  ;;  %v728_v5 = vmul.f32 0.6931472, %v1210_v37  ;;  %vm868_vm6 = vcmp.eq.s32.totalorder %v1895_v1, 10  ;;  %vm870_vm7 = vcmp.eq.s32.totalorder %v1895_v1, 11 }
  0xbe   : > { %v624_v9 = vsel %vm382_vm0, %v623_v38, 0.0  ;;  %v835_v42 = vmax.f32 %v834_v40, -100.0  ;;  %vm872_vm8 = vcmp.eq.s32.totalorder %v1895_v1, 12  ;;  %vm874_vm9 = vcmp.eq.s32.totalorder %v1895_v1, 13 }
  0xbf   : > { %v518_v41 = vsel %vm382_vm0, %v517_v39, 0.0  ;;  %v729_v43 = vmax.f32 %v728_v5, -100.0  ;;  %vm876_vm10 = vcmp.eq.s32.totalorder %v1895_v1, 14 }
  0xc0   : > { %577 = vadd.xlane.f32.xlu1 %v576_v52  ;;  %471 = vadd.xlane.f32.xlu0 %v470_v53  ;;  %v836_v44 = vsel %vm382_vm0, %v835_v42, 0.0 }
  0xc1   : > { %v730_v45 = vsel %vm382_vm0, %v729_v43, 0.0 }
  0xc4   : > { %789 = vadd.xlane.f32.xlu1 %v788_v58  ;;  %683 = vadd.xlane.f32.xlu0 %v682_v59 }
  0xc8   : > { %588 = vadd.xlane.f32.xlu1 %v587_v63  ;;  %482 = vadd.xlane.f32.xlu0 %v481_v11 }
  0xcc   : > { %800 = vadd.xlane.f32.xlu1 %v799_v0  ;;  %694 = vadd.xlane.f32.xlu0 %v693_v17 }
  0xd0   : > { %599 = vadd.xlane.f32.xlu1 %v598_v24  ;;  %493 = vadd.xlane.f32.xlu0 %v492_v2 }
  0xd4   : > { %811 = vadd.xlane.f32.xlu1 %v810_v6  ;;  %705 = vadd.xlane.f32.xlu0 %v704_v20 }
  0xd8   : > { %610 = vadd.xlane.f32.xlu1 %v609_v21  ;;  %504 = vadd.xlane.f32.xlu0 %v503_v34 }
  0xdc   : > { %822 = vadd.xlane.f32.xlu1 %v821_v3  ;;  %716 = vadd.xlane.f32.xlu0 %v715_v4 }
  0xe0   : > { %625 = vadd.xlane.f32.xlu1 %v624_v9  ;;  %519 = vadd.xlane.f32.xlu0 %v518_v41 }
  0xe4   : > { %837 = vadd.xlane.f32.xlu1 %v836_v44  ;;  %731 = vadd.xlane.f32.xlu0 %v730_v45 }
  0xe8   : > { %394 = vadd.xlane.f32.xlu1 %v393_v47  ;;  %384 = vadd.xlane.f32.xlu0 %v383_v48 }
  0xec   : > { %414 = vadd.xlane.f32.xlu1 %v413_v49  ;;  %404 = vadd.xlane.f32.xlu0 %v403_v50 }
 0x12d   : > { %v546_v52 = vpop.xlane.xlu1 %545  ;;  %v440_v53 = vpop.xlane.xlu0 %439 }
 0x12e   : > { %v547_v51 = vsel %vm382_vm0, %v546_v52, 0.0  ;;  %v441_v46 = vsel %vm382_vm0, %v440_v53, 0.0 }
 0x12f   : > { %v548_v54 = vrot.slane %v547_v51, 4  ;;  %v442_v55 = vrot.slane %v441_v46, 4 }
 0x131   : > { %v549_v56 = vadd.f32 %v548_v54, %v547_v51  ;;  %v443_v57 = vadd.f32 %v442_v55, %v441_v46  ;;  %v758_v58 = vpop.xlane.xlu1 %757  ;;  %v652_v59 = vpop.xlane.xlu0 %651 }
 0x132   : > { %v759_v60 = vsel %vm382_vm0, %v758_v58, 0.0  ;;  %v653_v61 = vsel %vm382_vm0, %v652_v59, 0.0 }
 0x133   : > { %v550_v62 = vrot.slane %v549_v56, 2  ;;  %v760_v63 = vrot.slane %v759_v60, 4  ;;  %v654_v7 = vrot.slane %v653_v61, 4  ;;  %v444_v8 = vrot.slane %v443_v57, 2 }
 0x135   : > { %v551_v10 = vadd.f32 %v550_v62, %v549_v56  ;;  %v761_v11 = vadd.f32 %v760_v63, %v759_v60  ;;  %v655_v12 = vadd.f32 %v654_v7, %v653_v61  ;;  %v642_v13 = vpop.xlane.xlu1 %641  ;;  %v430_v14 = vpop.xlane.xlu0 %429  ;;  %v445_v18 = vadd.f32 %v444_v8, %v443_v57 }
 0x136   : > { %v643_v15 = vsel %vm382_vm0, %v642_v13, 0.0  ;;  %v431_v0 = vsel %vm382_vm0, %v430_v14, 0.0 }
 0x137   : > { %v762_v16 = vrot.slane %v761_v11, 2  ;;  %v656_v17 = vrot.slane %v655_v12, 2  ;;  %v644_v19 = vrot.slane %v643_v15, 4  ;;  %v432_v23 = vrot.slane %v431_v0, 4 }
 0x138   : > { %v552_v24 = vrot.slane %v551_v10, 1  ;;  %v446_v25 = vrot.slane %v445_v18, 1 }
 0x139   : > { %v763_v2 = vadd.f32 %v762_v16, %v761_v11  ;;  %v657_v27 = vadd.f32 %v656_v17, %v655_v12  ;;  %v748_v26 = vpop.xlane.xlu1 %747  ;;  %v536_v22 = vpop.xlane.xlu0 %535  ;;  %v645_v6 = vadd.f32 %v644_v19, %v643_v15  ;;  %v433_v20 = vadd.f32 %v432_v23, %v431_v0 }
 0x13a   : > { %v749_v28 = vsel %vm382_vm0, %v748_v26, 0.0  ;;  %v537_v30 = vsel %vm382_vm0, %v536_v22, 0.0  ;;  %v1901_v35 = vadd.f32 %v552_v24, %v551_v10  ;;  %v447_v45 = vadd.f32 %v446_v25, %v445_v18 }
 0x13b   : > { %v750_v31 = vrot.slane %v749_v28, 4  ;;  %v538_v32 = vrot.slane %v537_v30, 4  ;;  %v764_v33 = vrot.slane %v763_v2, 1  ;;  %v646_v21 = vrot.slane %v645_v6, 2 }
 0x13c   : > { %v434_v34 = vrot.slane %v433_v20, 2  ;;  %v658_v36 = vrot.slane %v657_v27, 1 }
 0x13d   : > { %v751_v37 = vadd.f32 %v750_v31, %v749_v28  ;;  %v539_v3 = vadd.f32 %v538_v32, %v537_v30  ;;  %v556_v4 = vpop.xlane.xlu1 %555  ;;  %v450_v38 = vpop.xlane.xlu0 %449  ;;  %v647_v39 = vadd.f32 %v646_v21, %v645_v6  ;;  %v1908_v47 = vadd.f32 %v764_v33, %v763_v2 }
 0x13e   : > { %v435_v40 = vadd.f32 %v434_v34, %v433_v20  ;;  %v557_v5 = vsel %vm382_vm0, %v556_v4, 0.0  ;;  %v451_v9 = vsel %vm382_vm0, %v450_v38, 0.0  ;;  %v659_v55 = vadd.f32 %v658_v36, %v657_v27 }
 0x13f   : > { %v752_v41 = vrot.slane %v751_v37, 2  ;;  %v540_v42 = vrot.slane %v539_v3, 2  ;;  %v558_v43 = vrot.slane %v557_v5, 4  ;;  %v452_v44 = vrot.slane %v451_v9, 4 }
 0x140   : > { %v648_v48 = vrot.slane %v647_v39, 1  ;;  %v436_v49 = vrot.slane %v435_v40, 1 }
 0x141   : > { %v753_v50 = vadd.f32 %v752_v41, %v751_v37  ;;  %v541_v52 = vadd.f32 %v540_v42, %v539_v3  ;;  %v559_v53 = vadd.f32 %v558_v43, %v557_v5  ;;  %v453_v51 = vadd.f32 %v452_v44, %v451_v9  ;;  %v768_v46 = vpop.xlane.xlu1 %767  ;;  %v662_v54 = vpop.xlane.xlu0 %661 }
 0x142   : > { %v437_v56 = vadd.f32 %v436_v49, %v435_v40  ;;  %v769_v57 = vsel %vm382_vm0, %v768_v46, 0.0  ;;  %v663_v58 = vsel %vm382_vm0, %v662_v54, 0.0  ;;  %v649_v63 = vadd.f32 %v648_v48, %v647_v39 }
 0x143   : > { %v754_v59 = vrot.slane %v753_v50, 1  ;;  %v542_v60 = vrot.slane %v541_v52, 1  ;;  %v560_v61 = vrot.slane %v559_v53, 2  ;;  %v454_v62 = vrot.slane %v453_v51, 2 }
 0x144   : > { %v849_v7 = vsel %vm848_vm11, %v437_v56, 0.0  ;;  %v770_v29 = vrot.slane %v769_v57, 4  ;;  %v664_v8 = vrot.slane %v663_v58, 4  ;;  %vm878_vm11 = vcmp.eq.s32.totalorder %v1895_v1, 15 }
 0x145   : > { %v755_v10 = vadd.f32 %v754_v59, %v753_v50  ;;  %v543_v11 = vadd.f32 %v542_v60, %v541_v52  ;;  %v561_v12 = vadd.f32 %v560_v61, %v559_v53  ;;  %v455_v13 = vadd.f32 %v454_v62, %v453_v51  ;;  %v567_v14 = vpop.xlane.xlu1 %566  ;;  %v461_v15 = vpop.xlane.xlu0 %460 }
 0x146   : > { %v771_v0 = vadd.f32 %v770_v29, %v769_v57  ;;  %v665_v16 = vadd.f32 %v664_v8, %v663_v58  ;;  %v568_v17 = vsel %vm382_vm0, %v567_v14, 0.0  ;;  %v462_v18 = vsel %vm382_vm0, %v461_v15, 0.0 }
 0x147   : > { %v851_v19 = vsel %vm850_vm12, %v543_v11, %v849_v7  ;;  %v562_v23 = vrot.slane %v561_v12, 1  ;;  %v456_v24 = vrot.slane %v455_v13, 1  ;;  %v569_v2 = vrot.slane %v568_v17, 4 }
 0x148   : > { %v853_v27 = vsel %vm852_vm13, %v649_v63, %v851_v19  ;;  %v772_v26 = vrot.slane %v771_v0, 2  ;;  %v666_v22 = vrot.slane %v665_v16, 2  ;;  %v463_v6 = vrot.slane %v462_v18, 4 }
 0x149   : > { %v855_v20 = vsel %vm854_vm14, %v755_v10, %v853_v27  ;;  %v563_v28 = vadd.f32 %v562_v23, %v561_v12  ;;  %v457_v30 = vadd.f32 %v456_v24, %v455_v13  ;;  %v570_v31 = vadd.f32 %v569_v2, %v568_v17  ;;  %v779_v32 = vpop.xlane.xlu1 %778  ;;  %v673_v25 = vpop.xlane.xlu0 %672 }
 0x14a   : > { %v857_v33 = vsel %vm856_vm15, %v447_v45, %v855_v20  ;;  %v773_v21 = vadd.f32 %v772_v26, %v771_v0  ;;  %v667_v34 = vadd.f32 %v666_v22, %v665_v16  ;;  %v464_v36 = vadd.f32 %v463_v6, %v462_v18 }
 0x14b   : > { %v859_v37 = vsel %vm858_vm1, %v1901_v35, %v857_v33  ;;  %v571_v3 = vrot.slane %v570_v31, 2  ;;  %v780_v4 = vsel %vm382_vm0, %v779_v32, 0.0  ;;  %v674_v38 = vsel %vm382_vm0, %v673_v25, 0.0 }
 0x14c   : > { %v861_v39 = vsel %vm860_vm2, %v659_v55, %v859_v37  ;;  %v774_v40 = vrot.slane %v773_v21, 1  ;;  %v668_v5 = vrot.slane %v667_v34, 1  ;;  %v465_v9 = vrot.slane %v464_v36, 2 }
 0x14d   : > { %v863_v41 = vsel %vm862_vm3, %v1908_v47, %v861_v39  ;;  %v572_v42 = vadd.f32 %v571_v3, %v570_v31  ;;  %v781_v43 = vrot.slane %v780_v4, 4  ;;  %v675_v44 = vrot.slane %v674_v38, 4  ;;  %v578_v45 = vpop.xlane.xlu1 %577  ;;  %v472_v35 = vpop.xlane.xlu0 %471 }
 0x14e   : > { %v865_v48 = vsel %vm864_vm4, %v457_v30, %v863_v41  ;;  %v775_v49 = vadd.f32 %v774_v40, %v773_v21  ;;  %v669_v50 = vadd.f32 %v668_v5, %v667_v34  ;;  %v466_v52 = vadd.f32 %v465_v9, %v464_v36 }
 0x14f   : > { %v867_v53 = vsel %vm866_vm5, %v563_v28, %v865_v48  ;;  %v573_v51 = vrot.slane %v572_v42, 1  ;;  %v782_v46 = vadd.f32 %v781_v43, %v780_v4  ;;  %v676_v54 = vadd.f32 %v675_v44, %v674_v38 }
 0x150   : > { %v869_v47 = vsel %vm868_vm6, %v669_v50, %v867_v53  ;;  %v467_v55 = vrot.slane %v466_v52, 1  ;;  %v579_v56 = vsel %vm382_vm0, %v578_v45, 0.0  ;;  %v473_v57 = vsel %vm382_vm0, %v472_v35, 0.0 }
 0x151   : > { %v574_v58 = vadd.f32 %v573_v51, %v572_v42  ;;  %v871_v59 = vsel %vm870_vm7, %v775_v49, %v869_v47  ;;  %v783_v60 = vrot.slane %v782_v46, 2  ;;  %v677_v61 = vrot.slane %v676_v54, 2  ;;  %v790_v62 = vpop.xlane.xlu1 %789  ;;  %v684_v63 = vpop.xlane.xlu0 %683 }
 0x152   : > { %v468_v7 = vadd.f32 %v467_v55, %v466_v52  ;;  %v580_v29 = vrot.slane %v579_v56, 4  ;;  %v474_v8 = vrot.slane %v473_v57, 4  ;;  %v791_v10 = vsel %vm382_vm0, %v790_v62, 0.0 }
 0x153   : > { %v784_v11 = vadd.f32 %v783_v60, %v782_v46  ;;  %v678_v12 = vadd.f32 %v677_v61, %v676_v54  ;;  %vm880_vm12 = vcmp.eq.s32.totalorder %v1895_v1, 16  ;;  %v792_v13 = vrot.slane %v791_v10, 4 }
 0x154   : > { %v685_v14 = vsel %vm382_vm0, %v684_v63, 0.0  ;;  %v873_v15 = vsel %vm872_vm8, %v468_v7, %v871_v59  ;;  %v581_v0 = vadd.f32 %v580_v29, %v579_v56  ;;  %v475_v16 = vadd.f32 %v474_v8, %v473_v57 }
 0x155   : > { %vm882_vm13 = vcmp.eq.s32.totalorder %v1895_v1, 17  ;;  %v686_v17 = vrot.slane %v685_v14, 4  ;;  %v785_v18 = vrot.slane %v784_v11, 1  ;;  %v875_v19 = vsel %vm874_vm9, %v574_v58, %v873_v15  ;;  %v589_v2 = vpop.xlane.xlu1 %588  ;;  %v483_v27 = vpop.xlane.xlu0 %482 }
 0x156   : > { %v679_v23 = vrot.slane %v678_v12, 1  ;;  %v793_v24 = vadd.f32 %v792_v13, %v791_v10  ;;  %vm884_vm14 = vcmp.eq.s32.totalorder %v1895_v1, 18  ;;  %v582_v26 = vrot.slane %v581_v0, 2 }
 0x157   : > { %v476_v22 = vrot.slane %v475_v16, 2  ;;  %v687_v6 = vadd.f32 %v686_v17, %v685_v14  ;;  %v590_v20 = vsel %vm382_vm0, %v589_v2, 0.0  ;;  %v786_v28 = vadd.f32 %v785_v18, %v784_v11 }
 0x158   : > { %v680_v30 = vadd.f32 %v679_v23, %v678_v12  ;;  %v794_v31 = vrot.slane %v793_v24, 2  ;;  %v591_v32 = vrot.slane %v590_v20, 4  ;;  %v583_v25 = vadd.f32 %v582_v26, %v581_v0 }
 0x159   : > { %v477_v33 = vadd.f32 %v476_v22, %v475_v16  ;;  %v688_v21 = vrot.slane %v687_v6, 2  ;;  %vm886_vm15 = vcmp.eq.s32.totalorder %v1895_v1, 19  ;;  %v484_v34 = vsel %vm382_vm0, %v483_v27, 0.0  ;;  %v801_v38 = vpop.xlane.xlu1 %800  ;;  %v695_v39 = vpop.xlane.xlu0 %694 }
 0x15a   : > { %v877_v36 = vsel %vm876_vm10, %v680_v30, %v875_v19  ;;  %v795_v37 = vadd.f32 %v794_v31, %v793_v24  ;;  %v592_v3 = vadd.f32 %v591_v32, %v590_v20  ;;  %v485_v4 = vrot.slane %v484_v34, 4 }
 0x15b   : > { %v584_v40 = vrot.slane %v583_v25, 1  ;;  %v879_v5 = vsel %vm878_vm11, %v786_v28, %v877_v36  ;;  %v478_v9 = vrot.slane %v477_v33, 1  ;;  %v689_v41 = vadd.f32 %v688_v21, %v687_v6 }
 0x15c   : > { %vm888_vm1 = vcmp.eq.s32.totalorder %v1895_v1, 20  ;;  %v796_v42 = vrot.slane %v795_v37, 1  ;;  %v593_v43 = vrot.slane %v592_v3, 2  ;;  %v486_v44 = vadd.f32 %v485_v4, %v484_v34 }
 0x15d   : > { %v802_v45 = vsel %vm382_vm0, %v801_v38, 0.0  ;;  %vm890_vm2 = vcmp.eq.s32.totalorder %v1895_v1, 21  ;;  %v585_v35 = vadd.f32 %v584_v40, %v583_v25  ;;  %v479_v48 = vadd.f32 %v478_v9, %v477_v33  ;;  %v600_v54 = vpop.xlane.xlu1 %599  ;;  %v494_v47 = vpop.xlane.xlu0 %493 }
 0x15e   : > { %v690_v49 = vrot.slane %v689_v41, 1  ;;  %v803_v50 = vrot.slane %v802_v45, 4  ;;  %v797_v52 = vadd.f32 %v796_v42, %v795_v37  ;;  %v594_v53 = vadd.f32 %v593_v43, %v592_v3 }
 0x15f   : > { %v487_v51 = vrot.slane %v486_v44, 2  ;;  %v696_v46 = vsel %vm382_vm0, %v695_v39, 0.0  ;;  %v881_v55 = vsel %vm880_vm12, %v479_v48, %v879_v5  ;;  %vm892_vm3 = vcmp.eq.s32.totalorder %v1895_v1, 22 }
 0x160   : > { %v691_v56 = vadd.f32 %v690_v49, %v689_v41  ;;  %v804_v57 = vadd.f32 %v803_v50, %v802_v45  ;;  %v697_v58 = vrot.slane %v696_v46, 4  ;;  %v883_v59 = vsel %vm882_vm13, %v585_v35, %v881_v55 }
 0x161   : > { %v595_v60 = vrot.slane %v594_v53, 1  ;;  %v488_v61 = vadd.f32 %v487_v51, %v486_v44  ;;  %v601_v62 = vsel %vm382_vm0, %v600_v54, 0.0  ;;  %vm894_vm4 = vcmp.eq.s32.totalorder %v1895_v1, 23  ;;  %v812_v13 = vpop.xlane.xlu1 %811  ;;  %v706_v14 = vpop.xlane.xlu0 %705 }
 0x162   : > { %v885_v63 = vsel %vm884_vm14, %v691_v56, %v883_v59  ;;  %v805_v7 = vrot.slane %v804_v57, 2  ;;  %v698_v29 = vadd.f32 %v697_v58, %v696_v46  ;;  %v602_v8 = vrot.slane %v601_v62, 4 }
 0x163   : > { %v596_v10 = vadd.f32 %v595_v60, %v594_v53  ;;  %v489_v11 = vrot.slane %v488_v61, 1  ;;  %v495_v12 = vsel %vm382_vm0, %v494_v47, 0.0  ;;  %v887_v18 = vsel %vm886_vm15, %v797_v52, %v885_v63 }
 0x164   : > { %v806_v15 = vadd.f32 %v805_v7, %v804_v57  ;;  %v699_v0 = vrot.slane %v698_v29, 2  ;;  %v603_v16 = vadd.f32 %v602_v8, %v601_v62  ;;  %v496_v17 = vrot.slane %v495_v12, 4 }
 0x165   : > { %v490_v19 = vadd.f32 %v489_v11, %v488_v61  ;;  %v813_v23 = vsel %vm382_vm0, %v812_v13, 0.0  ;;  %v707_v24 = vsel %vm382_vm0, %v706_v14, 0.0  ;;  %vm896_vm5 = vcmp.eq.s32.totalorder %v1895_v1, 24  ;;  %v611_v30 = vpop.xlane.xlu1 %610  ;;  %v505_v31 = vpop.xlane.xlu0 %504 }
 0x166   : > { %v807_v2 = vrot.slane %v806_v15, 1  ;;  %v700_v27 = vadd.f32 %v699_v0, %v698_v29  ;;  %v604_v26 = vrot.slane %v603_v16, 2  ;;  %v497_v22 = vadd.f32 %v496_v17, %v495_v12 }
 0x167   : > { %v889_v6 = vsel %vm888_vm1, %v490_v19, %v887_v18  ;;  %v814_v20 = vrot.slane %v813_v23, 4  ;;  %vm898_vm6 = vcmp.eq.s32.totalorder %v1895_v1, 25  ;;  %v708_v28 = vrot.slane %v707_v24, 4 }
 0x168   : > { %v808_v32 = vadd.f32 %v807_v2, %v806_v15  ;;  %v891_v25 = vsel %vm890_vm2, %v596_v10, %v889_v6  ;;  %v701_v33 = vrot.slane %v700_v27, 1  ;;  %v605_v21 = vadd.f32 %v604_v26, %v603_v16 }
 0x169   : > { %vm900_vm7 = vcmp.eq.s32.totalorder %v1895_v1, 26  ;;  %v498_v34 = vrot.slane %v497_v22, 2  ;;  %v815_v36 = vadd.f32 %v814_v20, %v813_v23  ;;  %v709_v37 = vadd.f32 %v708_v28, %v707_v24  ;;  %v823_v43 = vpop.xlane.xlu1 %822  ;;  %v717_v44 = vpop.xlane.xlu0 %716 }
 0x16a   : > { %v612_v3 = vsel %vm382_vm0, %v611_v30, 0.0  ;;  %vm902_vm8 = vcmp.eq.s32.totalorder %v1895_v1, 27  ;;  %v702_v4 = vadd.f32 %v701_v33, %v700_v27  ;;  %v606_v38 = vrot.slane %v605_v21, 1 }
 0x16b   : > { %v613_v39 = vrot.slane %v612_v3, 4  ;;  %v506_v40 = vsel %vm382_vm0, %v505_v31, 0.0  ;;  %v499_v5 = vadd.f32 %v498_v34, %v497_v22  ;;  %v816_v9 = vrot.slane %v815_v36, 2 }
 0x16c   : > { %v710_v41 = vrot.slane %v709_v37, 2  ;;  %v507_v42 = vrot.slane %v506_v40, 4  ;;  %v893_v45 = vsel %vm892_vm3, %v702_v4, %v891_v25  ;;  %v607_v35 = vadd.f32 %v606_v38, %v605_v21 }
 0x16d   : > { %v614_v48 = vadd.f32 %v613_v39, %v612_v3  ;;  %v824_v49 = vsel %vm382_vm0, %v823_v43, 0.0  ;;  %v895_v50 = vsel %vm894_vm4, %v808_v32, %v893_v45  ;;  %v500_v52 = vrot.slane %v499_v5, 1  ;;  %v626_v60 = vpop.xlane.xlu1 %625  ;;  %v520_v61 = vpop.xlane.xlu0 %519 }
 0x16e   : > { %v817_v53 = vadd.f32 %v816_v9, %v815_v36  ;;  %v711_v51 = vadd.f32 %v710_v41, %v709_v37  ;;  %vm904_vm9 = vcmp.eq.s32.totalorder %v1895_v1, 28  ;;  %v508_v54 = vadd.f32 %v507_v42, %v506_v40 }
 0x16f   : > { %v615_v46 = vrot.slane %v614_v48, 2  ;;  %v825_v47 = vrot.slane %v824_v49, 4  ;;  %vm906_vm10 = vcmp.eq.s32.totalorder %v1895_v1, 29  ;;  %v718_v55 = vsel %vm382_vm0, %v717_v44, 0.0 }
 0x170   : > { %v501_v56 = vadd.f32 %v500_v52, %v499_v5  ;;  %v818_v57 = vrot.slane %v817_v53, 1  ;;  %v712_v58 = vrot.slane %v711_v51, 1  ;;  %v719_v59 = vrot.slane %v718_v55, 4 }
 0x171   : > { %v616_v62 = vadd.f32 %v615_v46, %v614_v48  ;;  %v509_v63 = vrot.slane %v508_v54, 2  ;;  %v826_v7 = vadd.f32 %v825_v47, %v824_v49  ;;  %vm908_vm11 = vcmp.eq.s32.totalorder %v1895_v1, 30  ;;  %v838_v23 = vpop.xlane.xlu1 %837  ;;  %v732_v24 = vpop.xlane.xlu0 %731 }
 0x172   : > { %v627_v29 = vsel %vm382_vm0, %v626_v60, 0.0  ;;  %v897_v8 = vsel %vm896_vm5, %v501_v56, %v895_v50  ;;  %v819_v10 = vadd.f32 %v818_v57, %v817_v53  ;;  %v713_v11 = vadd.f32 %v712_v58, %v711_v51 }
 0x173   : > { %v720_v12 = vadd.f32 %v719_v59, %v718_v55  ;;  %v899_v13 = vsel %vm898_vm6, %v607_v35, %v897_v8  ;;  %v617_v14 = vrot.slane %v616_v62, 1  ;;  %v510_v15 = vadd.f32 %v509_v63, %v508_v54 }
 0x174   : > { %v827_v0 = vrot.slane %v826_v7, 2  ;;  %v901_v16 = vsel %vm900_vm7, %v713_v11, %v899_v13  ;;  %v628_v18 = vrot.slane %v627_v29, 4  ;;  %vm910_vm12 = vcmp.eq.s32.totalorder %v1895_v1, 31 }
 0x175   : > { %v721_v17 = vrot.slane %v720_v12, 2  ;;  %v521_v19 = vsel %vm382_vm0, %v520_v61, 0.0  ;;  %v618_v2 = vadd.f32 %v617_v14, %v616_v62  ;;  %v903_v27 = vsel %vm902_vm8, %v819_v10, %v901_v16  ;;  %v395_v3 = vpop.xlane.xlu1 %394  ;;  %v385_v4 = vpop.xlane.xlu0 %384 }
 0x176   : > { %v511_v26 = vrot.slane %v510_v15, 1  ;;  %v828_v22 = vadd.f32 %v827_v0, %v826_v7  ;;  %v629_v20 = vadd.f32 %v628_v18, %v627_v29  ;;  %v522_v28 = vrot.slane %v521_v19, 4 }
 0x177   : > { %v722_v6 = vadd.f32 %v721_v17, %v720_v12  ;;  %v839_v30 = vsel %vm382_vm0, %v838_v23, 0.0  ;;  %v733_v33 = vsel %vm382_vm0, %v732_v24, 0.0  ;;  %v396_v5 = vsel %vm382_vm0, %v395_v3, 0.0 }
 0x178   : > { %v512_v31 = vadd.f32 %v511_v26, %v510_v15  ;;  %v829_v32 = vrot.slane %v828_v22, 1  ;;  %v840_v25 = vrot.slane %v839_v30, 4  ;;  %v630_v34 = vrot.slane %v629_v20, 2 }
 0x179   : > { %v723_v21 = vrot.slane %v722_v6, 1  ;;  %v523_v36 = vadd.f32 %v522_v28, %v521_v19  ;;  %v734_v37 = vrot.slane %v733_v33, 4  ;;  %v397_v35 = vrot.slane %v396_v5, 4  ;;  %v415_v51 = vpop.xlane.xlu1 %414  ;;  %v405_v55 = vpop.xlane.xlu0 %404 }
 0x17a   : > { %v905_v38 = vsel %vm904_vm9, %v512_v31, %v903_v27  ;;  %v830_v39 = vadd.f32 %v829_v32, %v828_v22  ;;  %v841_v40 = vadd.f32 %v840_v25, %v839_v30  ;;  %v631_v42 = vadd.f32 %v630_v34, %v629_v20 }
 0x17b   : > { %v907_v9 = vsel %vm906_vm10, %v618_v2, %v905_v38  ;;  %v724_v41 = vadd.f32 %v723_v21, %v722_v6  ;;  %v524_v43 = vrot.slane %v523_v36, 2  ;;  %v735_v45 = vadd.f32 %v734_v37, %v733_v33 }
 0x17c   : > { %v842_v44 = vrot.slane %v841_v40, 2  ;;  %v386_v48 = vsel %vm382_vm0, %v385_v4, 0.0  ;;  %v632_v50 = vrot.slane %v631_v42, 1  ;;  %v398_v47 = vadd.f32 %v397_v35, %v396_v5 }
 0x17d   : > { %v909_v49 = vsel %vm908_vm11, %v724_v41, %v907_v9  ;;  %v525_v52 = vadd.f32 %v524_v43, %v523_v36  ;;  %v387_v53 = vrot.slane %v386_v48, 4  ;;  %v736_v54 = vrot.slane %v735_v45, 2  ;;  %v928_v36 = vld [vmem:[%s1885_s21] sm:$0x1] }
 0x17e   : > { %v843_v46 = vadd.f32 %v842_v44, %v841_v40  ;;  %vm912_vm13 = vcmp.eq.s32.totalorder %v1895_v1, 32  ;;  %v416_v58 = vsel %vm382_vm0, %v415_v51, 0.0  ;;  %v911_v59 = vsel %vm910_vm12, %v830_v39, %v909_v49 }
 0x17f   : > { %v526_v56 = vrot.slane %v525_v52, 1  ;;  %v388_v57 = vadd.f32 %v387_v53, %v386_v48  ;;  %v737_v60 = vadd.f32 %v736_v54, %v735_v45  ;;  %v399_v61 = vrot.slane %v398_v47, 2 }
 0x180   : > { %v417_v62 = vrot.slane %v416_v58, 4  ;;  %v633_v63 = vadd.f32 %v632_v50, %v631_v42  ;;  %v406_v8 = vsel %vm382_vm0, %v405_v55, 0.0  ;;  %v844_v10 = vrot.slane %v843_v46, 1 }
 0x181   : > { %v527_v7 = vadd.f32 %v526_v56, %v525_v52  ;;  %v389_v29 = vrot.slane %v388_v57, 2  ;;  %v738_v11 = vrot.slane %v737_v60, 1  ;;  %v400_v12 = vadd.f32 %v399_v61, %v398_v47 }
 0x182   : > { %v418_v13 = vadd.f32 %v417_v62, %v416_v58  ;;  %vm914_vm14 = vcmp.eq.s32.totalorder %v1895_v1, 33  ;;  %v407_v0 = vrot.slane %v406_v8, 4  ;;  %vm916_vm15 = vcmp.eq.s32.totalorder %v1895_v1, 34 }
 0x183   : > { %v913_v14 = vsel %vm912_vm13, %v527_v7, %v911_v59  ;;  %v390_v15 = vadd.f32 %v389_v29, %v388_v57  ;;  %v739_v16 = vadd.f32 %v738_v11, %v737_v60  ;;  %v845_v23 = vadd.f32 %v844_v10, %v843_v46 }
 0x184   : > { %v419_v17 = vrot.slane %v418_v13, 2  ;;  %v408_v19 = vadd.f32 %v407_v0, %v406_v8  ;;  %v915_v24 = vsel %vm914_vm14, %v633_v63, %v913_v14  ;;  %v401_v2 = vrot.slane %v400_v12, 1 }
 0x185   : > { %v391_v18 = vrot.slane %v390_v15, 1  ;;  %v917_v26 = vsel %vm916_vm15, %v739_v16, %v915_v24  ;;  %vm918_vm0 = vcmp.eq.s32.totalorder %v1895_v1, 35  ;;  %vm920_vm1 = vcmp.eq.s32.totalorder %v1895_v1, 36 }
 0x186   : > { %v420_v27 = vadd.f32 %v419_v17, %v418_v13  ;;  %v409_v6 = vrot.slane %v408_v19, 2  ;;  %v402_v30 = vadd.f32 %v401_v2, %v400_v12  ;;  %v919_v31 = vsel %vm918_vm0, %v845_v23, %v917_v26 }
 0x187   : > { %v392_v22 = vadd.f32 %v391_v18, %v390_v15  ;;  %vm922_vm2 = vcmp.eq.s32.totalorder %v1895_v1, 37  ;;  %vm924_vm3 = vcmp.eq.s32.totalorder %v1895_v1, 38  ;;  %vm926_vm4 = vcmp.eq.s32.totalorder %v1895_v1, 39 }
 0x188   : > { %v421_v20 = vrot.slane %v420_v27, 1  ;;  %v410_v28 = vadd.f32 %v409_v6, %v408_v19 }
 0x189   : > { %v921_v32 = vsel %vm920_vm1, %v392_v22, %v919_v31 }
 0x18a   : > { %v411_v25 = vrot.slane %v410_v28, 1  ;;  %v422_v33 = vadd.f32 %v421_v20, %v420_v27  ;;  %v923_v34 = vsel %vm922_vm2, %v402_v30, %v921_v32 }
 0x18c   : > { %v412_v21 = vadd.f32 %v411_v25, %v410_v28 }
 0x18e   : > { %v925_v37 = vsel %vm924_vm3, %v412_v21, %v923_v34 }
 0x18f   : > { %v927_v3 = vsel %vm926_vm4, %v422_v33, %v925_v37 }
 0x190   : > { %v929_v4 = vadd.f32 %v928_v36, %v927_v3 }
 0x192   : > { %930 = vst [vmem:[%s1885_s21] sm:$0x1] %v929_v4 }
 0x193   : > { %1344 = shalt.err (!%p1341_p7)
}
 0x194   : > { %s1345_s25 = scalar_lea.hbm %s2049_s9, 16  ;;  %s1349_s26 = scalar_lea.hbm %s2103_s4, 32 }
 0x195   : > { %p1346_p3 = scmp.ne.s32.totalorder %s2049_s9, %s1345_s25  ;;  %p1350_p12 = scmp.lt.u32.totalorder %s2049_s9, %s2103_s4 }
 0x196   : > { %p1351_p8 = scmp.lt.u32.totalorder %s1349_s26, %s1345_s25  ;;  %p1353_p0 = scmp.lt.u32.totalorder %s1345_s25, %s2049_s9 }
 0x197   : > { %p1347_p10 = pnand %p1346_p3, %p2132_p1 }
 0x198   : > { %p1352_p4 = por %p1351_p8, %p1350_p12 }
 0x199   : > { %p1348_p9 = pneg %p1347_p10 }
 0x19a   : > { %p1354_p6 = por %p1353_p0, %p1352_p4 }
 0x19c   : > { %p1355_p13 = pnand %p1354_p6, %p1348_p9 }
 0x19e   : > { %1358 = shalt.err (!%p1355_p13)
}
 0x19f   : > { %1130 = dma.vmem_to_hbm [thread:$0]  (%p2132_p1), %s2051_s11, 16, %s2049_s9, %s932_s12  }
 0x1a0 PF: > { %s956_s22 = sand.u32 1, %s1401_s15   ;;  %p2133_p11 = scmp.ne.s32.totalorder %s2119_s30, 0 }
 0x1a1   : > { %p2134_p2 = scmp.ge.s32.totalorder %s1421_s20, 2  ;;  %s957_s24 = scalar_lea.sflag [#allocation4], %s956_s22 }
 0x1a3   : > { %p1146_p5 = pnand %p2134_p2, %p2133_p11 }
 0x1a5   : > { %1396 = dma.done.wait (!%p1146_p5), %s957_s24, 16  }
 0x1a6   : > { %1398 = vsyncadd (!%p1146_p5), %s957_s24, 4294967280  ;;  %s26_s20 = sadd.s32 1, %s1421_s20   ;;  %s2135_s28 = sld [smem:[#allocation16_spill]] }
 0x1a7   : > { %p23_p7 = scmp.ge.s32.totalorder %s26_s20, 4   ;;  %s2136_s7 = sld [smem:[#allocation15_spill]] }
 0x1a8   : > { %s2137_s15 = smov %s1405_s16  ;;  %s2138_s16 = smov %s1409_s17 }
 0x1a9   : > { %s2140_s18 = smov %s1417_s19  ;;  %25 = sbr.rel (!%p23_p7) target bundleno = 13 (0xd), region = 128 }
 0x1ac   : > { %s2139_s17 = smov %s2135_s28 }
 0x1ad   : > { %s2141_s19 = smov %s2136_s7 }
 0x1b0   :  { %961 = vsyncpa [#allocation3], 1 }
 0x1b1   :  { %963 = vsyncpa [#allocation3 + $0x1], 1 }
 0x1b2   :  { %964 = vsyncpa [#allocation6], 1 }
 0x1b3   :  { %966 = vsyncpa [#allocation6 + $0x1], 1 }
 0x1b4   :  { %967 = vsyncpa [#allocation9], 1 }
 0x1b5   :  { %969 = vsyncpa [#allocation9 + $0x1], 1 }
 0x1b6   :  { %970 = vsyncpa [#allocation4], 1 }
 0x1b7   :  { %972 = vsyncpa [#allocation4 + $0x1], 1 }

</bundles_post_ra>
